<compile_context>
chip_gen: v7x
topology: tpu7x:2x2x1
jax: 0.10.0
libtpu: 0.0.40
codegen_flags: <defaults>
</compile_context>

<pallas_src>
import functools

import jax
import jax.numpy as jnp
from jax.experimental import pallas as pl
from jax.experimental.pallas import tpu as pltpu


# ----------------------------------------------------------------------------
# Head kernel (layers 1-4): out = LeakyReLU(W @ patches) + shift, lane-dense.
#   W: (Cout, 9*Cin) bf16, patches: (9*Cin, tM) bf16, shift: (Cout, 1) f32.
# ----------------------------------------------------------------------------
def _head_kernel(w_ref, x_ref, shift_ref, o_ref):
    acc = jnp.dot(w_ref[...], x_ref[...], preferred_element_type=jnp.float32)
    acc = jnp.where(acc > 0.0, acc, 0.2 * acc)          # LeakyReLU(0.2)
    o_ref[...] = (acc + shift_ref[...]).astype(o_ref.dtype)


def head_matmul(w_bf16, patches_bf16, shift):
    """(Cout,9Cin)bf16 @ (9Cin,M)bf16 -> LeakyReLU -> +shift -> (Cout,M)bf16."""
    cout, k = w_bf16.shape
    _, m = patches_bf16.shape

    # Single grid step (per-step pipeline overhead > compute at these sizes);
    # only a 2-way "parallel" M split for the big layer-1 matmul so the second
    # v7x TensorCore gets fed.  M/2 stays a multiple of 128 (lane-aligned).
    if m >= 1024 and m % 256 == 0:
        tm, grid = m // 2, (2,)
    else:
        tm, grid = m, (1,)

    return pl.pallas_call(
        _head_kernel,
        out_shape=jax.ShapeDtypeStruct((cout, m), jnp.bfloat16),
        grid=grid,
        in_specs=[
            pl.BlockSpec((cout, k), lambda i: (0, 0)),
            pl.BlockSpec((k, tm), lambda i: (0, i)),
            pl.BlockSpec((cout, 1), lambda i: (0, 0)),
        ],
        out_specs=pl.BlockSpec((cout, tm), lambda i: (0, i)),
        compiler_params=pltpu.CompilerParams(dimension_semantics=("parallel",)),
    )(w_bf16, patches_bf16, shift)


def head_conv_block(x_chwn, w_mat, shift):
    """Conv2d(3,stride 2,pad 1,no bias) -> LeakyReLU -> BN shift.  (C,H,W,N) bf16."""
    cin, h, w, n = x_chwn.shape
    cout = w_mat.shape[0]
    ho, wo = -(-h // 2), -(-w // 2)                      # ceil(H/2)

    xp = jnp.pad(x_chwn, ((0, 0), (1, 1), (1, 1), (0, 0)))
    taps = [xp[:, ky:ky + 2 * ho - 1:2, kx:kx + 2 * wo - 1:2, :]
            for ky in range(3) for kx in range(3)]       # 9 x (Cin, Ho, Wo, N)
    patches = jnp.concatenate(taps, axis=0).reshape(9 * cin, ho * wo * n)

    out = head_matmul(w_mat, patches, shift)             # (Cout, Ho*Wo*N) bf16
    return out.reshape(cout, ho, wo, n)


# ----------------------------------------------------------------------------
# Tail kernel: layers 5-8 (input spatial 4x4) + linear head, fully fused.
# Exactly 5 MXU dots; activations never leave VMEM/vregs.
#   x_ref: (16, N, C4) bf16 with position index p = iy*4 + ix.
# ----------------------------------------------------------------------------
def _tail_kernel(x_ref, w5_ref, s5_ref, w6_ref, s6_ref, w7_ref, s7_ref,
                 w8_ref, s8_ref, lw_ref, lb_ref, o_ref, *, n, c4):
    zeros = jnp.zeros((n, c4), jnp.bfloat16)

    def tap(iy, ix):                                     # static padding check
        if 0 <= iy < 4 and 0 <= ix < 4:
            return x_ref[iy * 4 + ix]                    # (N, C4)
        return zeros

    # --- layer 5: 4x4 -> 2x2.  One dot: rows = 2x2 positions x N, K = 9*C4. ---
    row_blocks = []
    for oy in range(2):
        for ox in range(2):
            taps = [tap(2 * oy + ky - 1, 2 * ox + kx - 1)
                    for ky in range(3) for kx in range(3)]
            row_blocks.append(jnp.concatenate(taps, axis=-1))      # (N, 9*C4)
    lhs5 = jnp.concatenate(row_blocks, axis=0)                      # (4N, 9*C4)
    y5 = jnp.dot(lhs5, w5_ref[...], preferred_element_type=jnp.float32)
    y5 = (jnp.where(y5 > 0.0, y5, 0.2 * y5) + s5_ref[...]).astype(jnp.bfloat16)

    # --- layer 6: 2x2 -> 1x1.  Only the 4 interior taps are non-zero. ---
    lhs6 = jnp.concatenate([y5[p * n:(p + 1) * n, :] for p in range(4)], axis=-1)
    y6 = jnp.dot(lhs6, w6_ref[...], preferred_element_type=jnp.float32)
    y6 = jnp.where(y6 > 0.0, y6, 0.2 * y6) + s6_ref[...]

    # --- layers 7 / 8: 1x1 -> 1x1, centre tap only. Layer 8 uses ReLU. ---
    y7 = jnp.dot(y6.astype(jnp.bfloat16), w7_ref[...],
                 preferred_element_type=jnp.float32)
    y7 = jnp.where(y7 > 0.0, y7, 0.2 * y7) + s7_ref[...]
    y8 = jnp.dot(y7.astype(jnp.bfloat16), w8_ref[...],
                 preferred_element_type=jnp.float32)
    y8 = jnp.maximum(y8, 0.0) + s8_ref[...]

    # --- linear head ---
    o_ref[...] = (jnp.dot(y8.astype(jnp.bfloat16), lw_ref[...],
                          preferred_element_type=jnp.float32) + lb_ref[...])


def _full_spec(a):
    nd = a.ndim
    return pl.BlockSpec(a.shape, lambda i, _nd=nd: (0,) * _nd)


def tail_forward(x_pnc, tail_params, batch_n, out_nc):
    inputs = (x_pnc,) + tuple(tail_params)
    return pl.pallas_call(
        functools.partial(_tail_kernel, n=batch_n, c4=x_pnc.shape[2]),
        out_shape=jax.ShapeDtypeStruct((batch_n, out_nc), jnp.float32),
        grid=(1,),
        in_specs=[_full_spec(a) for a in inputs],
        out_specs=pl.BlockSpec((batch_n, out_nc), lambda i: (0, 0)),
        compiler_params=pltpu.CompilerParams(dimension_semantics=("arbitrary",)),
    )(*inputs)


# ----------------------------------------------------------------------------
# Parameters (deterministic, synthetic).  All layout transforms, BN-scale
# folding and bf16 casts are done here, once.
# ----------------------------------------------------------------------------
def init_params(key, input_nc, output_nc, nf):
    chans = [input_nc, nf, nf * 2, nf * 4, nf * 8, nf * 16, nf * 32, nf * 32, nf * 32]
    eps = 1e-5

    raw = []
    for li in range(8):
        cin, cout = chans[li], chans[li + 1]
        key, wk = jax.random.split(key)
        w = jax.random.normal(wk, (cout, cin, 3, 3), jnp.float32) * (2.0 / (9 * cin)) ** 0.5
        # BatchNorm2d inference defaults: gamma=1, beta=0, mean=0, var=1.
        gamma = jnp.ones((cout,), jnp.float32)
        beta = jnp.zeros((cout,), jnp.float32)
        mean = jnp.zeros((cout,), jnp.float32)
        var = jnp.ones((cout,), jnp.float32)
        scale = gamma / jnp.sqrt(var + eps)              # > 0 -> safe to fold
        shift = beta - mean * scale
        # act(x@W)*scale + shift == act(x@(W*scale)) + shift for scale > 0
        # (LeakyReLU / ReLU are positively homogeneous).
        raw.append((w * scale[:, None, None, None], shift))

    # Head layers 1-4: (Cout, 9*Cin) matmul weights, K ordered (tap, cin).
    head = []
    for li in range(4):
        w, shift = raw[li]
        cout, cin = w.shape[0], w.shape[1]
        w_mat = jnp.transpose(w, (0, 2, 3, 1)).reshape(cout, 9 * cin).astype(jnp.bfloat16)
        head.append((w_mat, shift.reshape(cout, 1)))

    # Tail layers 5-8: collapsed-tap matmul weights.
    def tap_major(w):                                    # -> (9*Cin, Cout)
        cout, cin = w.shape[0], w.shape[1]
        return jnp.transpose(w, (2, 3, 1, 0)).reshape(9 * cin, cout)

    (w5, sh5), (w6, sh6), (w7, sh7), (w8, sh8) = raw[4:]
    w5_mat = tap_major(w5).astype(jnp.bfloat16)                           # (9*Cin5, Cout5)
    w6_t = jnp.transpose(w6, (2, 3, 1, 0))                                # (3,3,Cin,Cout)
    w6_mat = jnp.concatenate([w6_t[1, 1], w6_t[1, 2],                     # taps hit by the
                              w6_t[2, 1], w6_t[2, 2]], axis=0).astype(jnp.bfloat16)  # 2x2 input
    w7_mat = w7[:, :, 1, 1].T.astype(jnp.bfloat16)                        # centre tap only
    w8_mat = w8[:, :, 1, 1].T.astype(jnp.bfloat16)

    key, lk, bk = jax.random.split(key, 3)
    lin_in = nf * 32
    lw = jax.random.normal(lk, (output_nc, lin_in), jnp.float32) * (1.0 / lin_in) ** 0.5
    lb = jax.random.normal(bk, (output_nc,), jnp.float32) * 0.01

    tail = (w5_mat, sh5.reshape(1, -1), w6_mat, sh6.reshape(1, -1),
            w7_mat, sh7.reshape(1, -1), w8_mat, sh8.reshape(1, -1),
            jnp.transpose(lw).astype(jnp.bfloat16), lb.reshape(1, output_nc))
    return {"head": head, "tail": tail}


# ----------------------------------------------------------------------------
# Full forward pass
# ----------------------------------------------------------------------------
def triangle_net_forward(x_nchw, params):
    # NCHW -> (C, H, W, N), bf16 once up front (9x fewer bytes through im2col).
    x = jnp.transpose(x_nchw, (1, 2, 3, 0)).astype(jnp.bfloat16)
    for (w_mat, shift) in params["head"]:                # layers 1-4 (LeakyReLU)
        x = head_conv_block(x, w_mat, shift)             # (Cout, Ho, Wo, N) bf16

    c4, h, w, n = x.shape
    assert h == w == 4, "head must reduce the spatial extent to 4x4 for the tail"
    # (C,4,4,N) -> (positions=16, N, C) tiles for the fused tail kernel (2 KiB).
    x_pnc = jnp.transpose(x, (1, 2, 3, 0)).reshape(16, n, c4)
    out_nc = params["tail"][-1].shape[1]
    out = tail_forward(x_pnc, params["tail"], n, out_nc)  # (N, output_nc) f32
    return out[:, :, None, None]                          # (N, output_nc, 1, 1)


if __name__ == "__main__":
    input_nc, output_nc, nf = 3, 10, 4
    N, H, W = 2, 64, 64  # 64 -> 32 -> 16 -> 8 -> 4 -> 2 -> 1 -> 1 -> 1

    key = jax.random.PRNGKey(0)
    key, xk = jax.random.split(key)
    x = jax.random.normal(xk, (N, input_nc, H, W), jnp.float32)
    params = init_params(key, input_nc, output_nc, nf)

    fwd = jax.jit(triangle_net_forward)
    out = jax.block_until_ready(fwd(x, params))

    assert out.shape == (N, output_nc, 1, 1), out.shape
    assert bool(jnp.all(jnp.isfinite(out)))
    print("KERNEL_OK")
</pallas_src>

<mosaic_0001>
module attributes {stable_mosaic.version = 11 : i64} {
  func.func @_head_kernel(%arg0: i32, %arg1: memref<4x27xbf16, #tpu.memory_space<vmem>>, %arg2: memref<27x1024xbf16, #tpu.memory_space<vmem>>, %arg3: memref<4x1xf32, #tpu.memory_space<vmem>>, %arg4: memref<4x1024xbf16, #tpu.memory_space<vmem>>) attributes {dimension_semantics = [#tpu.dimension_semantics<parallel>], iteration_bounds = array<i64: 2>, scalar_prefetch = 0 : i64, scratch_operands = 0 : i64, tpu.core_type = #tpu.core_type<tc>, window_params = [{pipeline_mode = #tpu.pipeline_mode<synchronous>, transform_indices = @transform_0, window_bounds = array<i64: 4, 27>}, {transform_indices = @transform_1, window_bounds = array<i64: 27, 1024>}, {pipeline_mode = #tpu.pipeline_mode<synchronous>, transform_indices = @transform_2, window_bounds = array<i64: 4, 1>}, {transform_indices = @transform_3, window_bounds = array<i64: 4, 1024>}]} {
    %c0 = arith.constant 0 : index
    %c0_0 = arith.constant 0 : index
    %0 = vector.load %arg1[%c0, %c0_0] : memref<4x27xbf16, #tpu.memory_space<vmem>>, vector<4x27xbf16>
    %c0_1 = arith.constant 0 : index
    %c0_2 = arith.constant 0 : index
    %1 = vector.load %arg2[%c0_1, %c0_2] : memref<27x1024xbf16, #tpu.memory_space<vmem>>, vector<27x1024xbf16>
    %cst = arith.constant dense<0.000000e+00> : vector<4x1024xf32>
    %2 = tpu.matmul %0, %1, %cst {dimension_numbers = #tpu.dot_dimension_numbers<[1], [0], [0], [1], [0, 0, 1, 1], [], []>} : vector<4x27xbf16>, vector<27x1024xbf16>, vector<4x1024xf32> -> vector<4x1024xf32>
    %cst_3 = arith.constant 0.000000e+00 : f32
    %3 = vector.broadcast %cst_3 : f32 to vector<4x1024xf32>
    %4 = arith.cmpf ogt, %2, %3 : vector<4x1024xf32>
    %cst_4 = arith.constant 2.000000e-01 : f32
    %5 = vector.broadcast %cst_4 : f32 to vector<4x1024xf32>
    %6 = arith.mulf %5, %2 : vector<4x1024xf32>
    %7 = arith.select %4, %2, %6 : vector<4x1024xi1>, vector<4x1024xf32>
    %c0_5 = arith.constant 0 : index
    %c0_6 = arith.constant 0 : index
    %8 = vector.load %arg3[%c0_5, %c0_6] : memref<4x1xf32, #tpu.memory_space<vmem>>, vector<4x1xf32>
    %9 = vector.broadcast %8 : vector<4x1xf32> to vector<4x1024xf32>
    %10 = arith.addf %7, %9 : vector<4x1024xf32>
    %11 = arith.truncf %10 : vector<4x1024xf32> to vector<4x1024xbf16>
    %c0_7 = arith.constant 0 : index
    %c0_8 = arith.constant 0 : index
    %12 = vector.load %arg4[%c0_7, %c0_8] : memref<4x1024xbf16, #tpu.memory_space<vmem>>, vector<4x1024xbf16>
    tpu.vector_store %arg4[%c0_7, %c0_8], %11 {strides = array<i32>} : memref<4x1024xbf16, #tpu.memory_space<vmem>>, vector<4x1024xbf16>,
    return
  }
  func.func @transform_0(%arg0: i32) -> (i32, i32) {
    %c0_i32 = arith.constant 0 : i32
    %c0_i32_0 = arith.constant 0 : i32
    %c0_i32_1 = arith.constant 0 : i32
    return %c0_i32, %c0_i32_0 : i32, i32
  }
  func.func @transform_1(%arg0: i32) -> (i32, i32) {
    %c0_i32 = arith.constant 0 : i32
    %c0_i32_0 = arith.constant 0 : i32
    return %c0_i32, %arg0 : i32, i32
  }
  func.func @transform_2(%arg0: i32) -> (i32, i32) {
    %c0_i32 = arith.constant 0 : i32
    %c0_i32_0 = arith.constant 0 : i32
    %c0_i32_1 = arith.constant 0 : i32
    return %c0_i32, %c0_i32_0 : i32, i32
  }
  func.func @transform_3(%arg0: i32) -> (i32, i32) {
    %c0_i32 = arith.constant 0 : i32
    %c0_i32_0 = arith.constant 0 : i32
    return %c0_i32, %arg0 : i32, i32
  }
}

module attributes {stable_mosaic.version = 11 : i64} {
  func.func @_head_kernel(%arg0: i32, %arg1: memref<8x36xbf16, #tpu.memory_space<vmem>>, %arg2: memref<36x512xbf16, #tpu.memory_space<vmem>>, %arg3: memref<8x1xf32, #tpu.memory_space<vmem>>, %arg4: memref<8x512xbf16, #tpu.memory_space<vmem>>) attributes {dimension_semantics = [#tpu.dimension_semantics<parallel>], iteration_bounds = array<i64: 1>, scalar_prefetch = 0 : i64, scratch_operands = 0 : i64, tpu.core_type = #tpu.core_type<tc>, window_params = [{pipeline_mode = #tpu.pipeline_mode<synchronous>, transform_indices = @transform_0, window_bounds = array<i64: 8, 36>}, {transform_indices = @transform_1, window_bounds = array<i64: 36, 512>}, {pipeline_mode = #tpu.pipeline_mode<synchronous>, transform_indices = @transform_2, window_bounds = array<i64: 8, 1>}, {transform_indices = @transform_3, window_bounds = array<i64: 8, 512>}]} {
    %c0 = arith.constant 0 : index
    %c0_0 = arith.constant 0 : index
    %0 = vector.load %arg1[%c0, %c0_0] : memref<8x36xbf16, #tpu.memory_space<vmem>>, vector<8x36xbf16>
    %c0_1 = arith.constant 0 : index
    %c0_2 = arith.constant 0 : index
    %1 = vector.load %arg2[%c0_1, %c0_2] : memref<36x512xbf16, #tpu.memory_space<vmem>>, vector<36x512xbf16>
    %cst = arith.constant dense<0.000000e+00> : vector<8x512xf32>
    %2 = tpu.matmul %0, %1, %cst {dimension_numbers = #tpu.dot_dimension_numbers<[1], [0], [0], [1], [0, 0, 1, 1], [], []>} : vector<8x36xbf16>, vector<36x512xbf16>, vector<8x512xf32> -> vector<8x512xf32>
    %cst_3 = arith.constant 0.000000e+00 : f32
    %3 = vector.broadcast %cst_3 : f32 to vector<8x512xf32>
    %4 = arith.cmpf ogt, %2, %3 : vector<8x512xf32>
    %cst_4 = arith.constant 2.000000e-01 : f32
    %5 = vector.broadcast %cst_4 : f32 to vector<8x512xf32>
    %6 = arith.mulf %5, %2 : vector<8x512xf32>
    %7 = arith.select %4, %2, %6 : vector<8x512xi1>, vector<8x512xf32>
    %c0_5 = arith.constant 0 : index
    %c0_6 = arith.constant 0 : index
    %8 = vector.load %arg3[%c0_5, %c0_6] : memref<8x1xf32, #tpu.memory_space<vmem>>, vector<8x1xf32>
    %9 = vector.broadcast %8 : vector<8x1xf32> to vector<8x512xf32>
    %10 = arith.addf %7, %9 : vector<8x512xf32>
    %11 = arith.truncf %10 : vector<8x512xf32> to vector<8x512xbf16>
    %c0_7 = arith.constant 0 : index
    %c0_8 = arith.constant 0 : index
    %12 = vector.load %arg4[%c0_7, %c0_8] : memref<8x512xbf16, #tpu.memory_space<vmem>>, vector<8x512xbf16>
    tpu.vector_store %arg4[%c0_7, %c0_8], %11 {strides = array<i32>} : memref<8x512xbf16, #tpu.memory_space<vmem>>, vector<8x512xbf16>,
    return
  }
  func.func @transform_0(%arg0: i32) -> (i32, i32) {
    %c0_i32 = arith.constant 0 : i32
    %c0_i32_0 = arith.constant 0 : i32
    %c0_i32_1 = arith.constant 0 : i32
    return %c0_i32, %c0_i32_0 : i32, i32
  }
  func.func @transform_1(%arg0: i32) -> (i32, i32) {
    %c0_i32 = arith.constant 0 : i32
    %c0_i32_0 = arith.constant 0 : i32
    return %c0_i32, %arg0 : i32, i32
  }
  func.func @transform_2(%arg0: i32) -> (i32, i32) {
    %c0_i32 = arith.constant 0 : i32
    %c0_i32_0 = arith.constant 0 : i32
    %c0_i32_1 = arith.constant 0 : i32
    return %c0_i32, %c0_i32_0 : i32, i32
  }
  func.func @transform_3(%arg0: i32) -> (i32, i32) {
    %c0_i32 = arith.constant 0 : i32
    %c0_i32_0 = arith.constant 0 : i32
    return %c0_i32, %arg0 : i32, i32
  }
}

module attributes {stable_mosaic.version = 11 : i64} {
  func.func @_head_kernel(%arg0: i32, %arg1: memref<16x72xbf16, #tpu.memory_space<vmem>>, %arg2: memref<72x128xbf16, #tpu.memory_space<vmem>>, %arg3: memref<16x1xf32, #tpu.memory_space<vmem>>, %arg4: memref<16x128xbf16, #tpu.memory_space<vmem>>) attributes {dimension_semantics = [#tpu.dimension_semantics<parallel>], iteration_bounds = array<i64: 1>, scalar_prefetch = 0 : i64, scratch_operands = 0 : i64, tpu.core_type = #tpu.core_type<tc>, window_params = [{pipeline_mode = #tpu.pipeline_mode<synchronous>, transform_indices = @transform_0, window_bounds = array<i64: 16, 72>}, {transform_indices = @transform_1, window_bounds = array<i64: 72, 128>}, {pipeline_mode = #tpu.pipeline_mode<synchronous>, transform_indices = @transform_2, window_bounds = array<i64: 16, 1>}, {transform_indices = @transform_3, window_bounds = array<i64: 16, 128>}]} {
    %c0 = arith.constant 0 : index
    %c0_0 = arith.constant 0 : index
    %0 = vector.load %arg1[%c0, %c0_0] : memref<16x72xbf16, #tpu.memory_space<vmem>>, vector<16x72xbf16>
    %c0_1 = arith.constant 0 : index
    %c0_2 = arith.constant 0 : index
    %1 = vector.load %arg2[%c0_1, %c0_2] : memref<72x128xbf16, #tpu.memory_space<vmem>>, vector<72x128xbf16>
    %cst = arith.constant dense<0.000000e+00> : vector<16x128xf32>
    %2 = tpu.matmul %0, %1, %cst {dimension_numbers = #tpu.dot_dimension_numbers<[1], [0], [0], [1], [0, 0, 1, 1], [], []>} : vector<16x72xbf16>, vector<72x128xbf16>, vector<16x128xf32> -> vector<16x128xf32>
    %cst_3 = arith.constant 0.000000e+00 : f32
    %3 = vector.broadcast %cst_3 : f32 to vector<16x128xf32>
    %4 = arith.cmpf ogt, %2, %3 : vector<16x128xf32>
    %cst_4 = arith.constant 2.000000e-01 : f32
    %5 = vector.broadcast %cst_4 : f32 to vector<16x128xf32>
    %6 = arith.mulf %5, %2 : vector<16x128xf32>
    %7 = arith.select %4, %2, %6 : vector<16x128xi1>, vector<16x128xf32>
    %c0_5 = arith.constant 0 : index
    %c0_6 = arith.constant 0 : index
    %8 = vector.load %arg3[%c0_5, %c0_6] : memref<16x1xf32, #tpu.memory_space<vmem>>, vector<16x1xf32>
    %9 = vector.broadcast %8 : vector<16x1xf32> to vector<16x128xf32>
    %10 = arith.addf %7, %9 : vector<16x128xf32>
    %11 = arith.truncf %10 : vector<16x128xf32> to vector<16x128xbf16>
    %c0_7 = arith.constant 0 : index
    %c0_8 = arith.constant 0 : index
    %12 = vector.load %arg4[%c0_7, %c0_8] : memref<16x128xbf16, #tpu.memory_space<vmem>>, vector<16x128xbf16>
    tpu.vector_store %arg4[%c0_7, %c0_8], %11 {strides = array<i32>} : memref<16x128xbf16, #tpu.memory_space<vmem>>, vector<16x128xbf16>,
    return
  }
  func.func @transform_0(%arg0: i32) -> (i32, i32) {
    %c0_i32 = arith.constant 0 : i32
    %c0_i32_0 = arith.constant 0 : i32
    %c0_i32_1 = arith.constant 0 : i32
    return %c0_i32, %c0_i32_0 : i32, i32
  }
  func.func @transform_1(%arg0: i32) -> (i32, i32) {
    %c0_i32 = arith.constant 0 : i32
    %c0_i32_0 = arith.constant 0 : i32
    return %c0_i32, %arg0 : i32, i32
  }
  func.func @transform_2(%arg0: i32) -> (i32, i32) {
    %c0_i32 = arith.constant 0 : i32
    %c0_i32_0 = arith.constant 0 : i32
    %c0_i32_1 = arith.constant 0 : i32
    return %c0_i32, %c0_i32_0 : i32, i32
  }
  func.func @transform_3(%arg0: i32) -> (i32, i32) {
    %c0_i32 = arith.constant 0 : i32
    %c0_i32_0 = arith.constant 0 : i32
    return %c0_i32, %arg0 : i32, i32
  }
}

module attributes {stable_mosaic.version = 11 : i64} {
  func.func @_head_kernel(%arg0: i32, %arg1: memref<32x144xbf16, #tpu.memory_space<vmem>>, %arg2: memref<144x32xbf16, #tpu.memory_space<vmem>>, %arg3: memref<32x1xf32, #tpu.memory_space<vmem>>, %arg4: memref<32x32xbf16, #tpu.memory_space<vmem>>) attributes {dimension_semantics = [#tpu.dimension_semantics<parallel>], iteration_bounds = array<i64: 1>, scalar_prefetch = 0 : i64, scratch_operands = 0 : i64, tpu.core_type = #tpu.core_type<tc>, window_params = [{pipeline_mode = #tpu.pipeline_mode<synchronous>, transform_indices = @transform_0, window_bounds = array<i64: 32, 144>}, {transform_indices = @transform_1, window_bounds = array<i64: 144, 32>}, {pipeline_mode = #tpu.pipeline_mode<synchronous>, transform_indices = @transform_2, window_bounds = array<i64: 32, 1>}, {transform_indices = @transform_3, window_bounds = array<i64: 32, 32>}]} {
    %c0 = arith.constant 0 : index
    %c0_0 = arith.constant 0 : index
    %0 = vector.load %arg1[%c0, %c0_0] : memref<32x144xbf16, #tpu.memory_space<vmem>>, vector<32x144xbf16>
    %c0_1 = arith.constant 0 : index
    %c0_2 = arith.constant 0 : index
    %1 = vector.load %arg2[%c0_1, %c0_2] : memref<144x32xbf16, #tpu.memory_space<vmem>>, vector<144x32xbf16>
    %cst = arith.constant dense<0.000000e+00> : vector<32x32xf32>
    %2 = tpu.matmul %0, %1, %cst {dimension_numbers = #tpu.dot_dimension_numbers<[1], [0], [0], [1], [0, 0, 1, 1], [], []>} : vector<32x144xbf16>, vector<144x32xbf16>, vector<32x32xf32> -> vector<32x32xf32>
    %cst_3 = arith.constant 0.000000e+00 : f32
    %3 = vector.broadcast %cst_3 : f32 to vector<32x32xf32>
    %4 = arith.cmpf ogt, %2, %3 : vector<32x32xf32>
    %cst_4 = arith.constant 2.000000e-01 : f32
    %5 = vector.broadcast %cst_4 : f32 to vector<32x32xf32>
    %6 = arith.mulf %5, %2 : vector<32x32xf32>
    %7 = arith.select %4, %2, %6 : vector<32x32xi1>, vector<32x32xf32>
    %c0_5 = arith.constant 0 : index
    %c0_6 = arith.constant 0 : index
    %8 = vector.load %arg3[%c0_5, %c0_6] : memref<32x1xf32, #tpu.memory_space<vmem>>, vector<32x1xf32>
    %9 = vector.broadcast %8 : vector<32x1xf32> to vector<32x32xf32>
    %10 = arith.addf %7, %9 : vector<32x32xf32>
    %11 = arith.truncf %10 : vector<32x32xf32> to vector<32x32xbf16>
    %c0_7 = arith.constant 0 : index
    %c0_8 = arith.constant 0 : index
    %12 = vector.load %arg4[%c0_7, %c0_8] : memref<32x32xbf16, #tpu.memory_space<vmem>>, vector<32x32xbf16>
    tpu.vector_store %arg4[%c0_7, %c0_8], %11 {strides = array<i32>} : memref<32x32xbf16, #tpu.memory_space<vmem>>, vector<32x32xbf16>,
    return
  }
  func.func @transform_0(%arg0: i32) -> (i32, i32) {
    %c0_i32 = arith.constant 0 : i32
    %c0_i32_0 = arith.constant 0 : i32
    %c0_i32_1 = arith.constant 0 : i32
    return %c0_i32, %c0_i32_0 : i32, i32
  }
  func.func @transform_1(%arg0: i32) -> (i32, i32) {
    %c0_i32 = arith.constant 0 : i32
    %c0_i32_0 = arith.constant 0 : i32
    return %c0_i32, %arg0 : i32, i32
  }
  func.func @transform_2(%arg0: i32) -> (i32, i32) {
    %c0_i32 = arith.constant 0 : i32
    %c0_i32_0 = arith.constant 0 : i32
    %c0_i32_1 = arith.constant 0 : i32
    return %c0_i32, %c0_i32_0 : i32, i32
  }
  func.func @transform_3(%arg0: i32) -> (i32, i32) {
    %c0_i32 = arith.constant 0 : i32
    %c0_i32_0 = arith.constant 0 : i32
    return %c0_i32, %arg0 : i32, i32
  }
}

module attributes {stable_mosaic.version = 11 : i64} {
  func.func @_tail_kernel(%arg0: i32, %arg1: memref<16x2x32xbf16, #tpu.memory_space<vmem>>, %arg2: memref<288x64xbf16, #tpu.memory_space<vmem>>, %arg3: memref<1x64xf32, #tpu.memory_space<vmem>>, %arg4: memref<256x128xbf16, #tpu.memory_space<vmem>>, %arg5: memref<1x128xf32, #tpu.memory_space<vmem>>, %arg6: memref<128x128xbf16, #tpu.memory_space<vmem>>, %arg7: memref<1x128xf32, #tpu.memory_space<vmem>>, %arg8: memref<128x128xbf16, #tpu.memory_space<vmem>>, %arg9: memref<1x128xf32, #tpu.memory_space<vmem>>, %arg10: memref<128x10xbf16, #tpu.memory_space<vmem>>, %arg11: memref<1x10xf32, #tpu.memory_space<vmem>>, %arg12: memref<2x10xf32, #tpu.memory_space<vmem>>) attributes {dimension_semantics = [#tpu.dimension_semantics<arbitrary>], iteration_bounds = array<i64: 1>, scalar_prefetch = 0 : i64, scratch_operands = 0 : i64, tpu.core_type = #tpu.core_type<tc>, window_params = [{pipeline_mode = #tpu.pipeline_mode<synchronous>, transform_indices = @transform_0, window_bounds = array<i64: 16, 2, 32>}, {pipeline_mode = #tpu.pipeline_mode<synchronous>, transform_indices = @transform_1, window_bounds = array<i64: 288, 64>}, {pipeline_mode = #tpu.pipeline_mode<synchronous>, transform_indices = @transform_2, window_bounds = array<i64: 1, 64>}, {pipeline_mode = #tpu.pipeline_mode<synchronous>, transform_indices = @transform_3, window_bounds = array<i64: 256, 128>}, {pipeline_mode = #tpu.pipeline_mode<synchronous>, transform_indices = @transform_4, window_bounds = array<i64: 1, 128>}, {pipeline_mode = #tpu.pipeline_mode<synchronous>, transform_indices = @transform_5, window_bounds = array<i64: 128, 128>}, {pipeline_mode = #tpu.pipeline_mode<synchronous>, transform_indices = @transform_6, window_bounds = array<i64: 1, 128>}, {pipeline_mode = #tpu.pipeline_mode<synchronous>, transform_indices = @transform_7, window_bounds = array<i64: 128, 128>}, {pipeline_mode = #tpu.pipeline_mode<synchronous>, transform_indices = @transform_8, window_bounds = array<i64: 1, 128>}, {pipeline_mode = #tpu.pipeline_mode<synchronous>, transform_indices = @transform_9, window_bounds = array<i64: 128, 10>}, {pipeline_mode = #tpu.pipeline_mode<synchronous>, transform_indices = @transform_10, window_bounds = array<i64: 1, 10>}, {pipeline_mode = #tpu.pipeline_mode<synchronous>, transform_indices = @transform_11, window_bounds = array<i64: 2, 10>}]} {
    %cst = arith.constant 0.000000e+00 : bf16
    %0 = vector.broadcast %cst : bf16 to vector<2x32xbf16>
    %c0 = arith.constant 0 : index
    %c0_0 = arith.constant 0 : index
    %c0_1 = arith.constant 0 : index
    %1 = vector.load %arg1[%c0, %c0_0, %c0_1] : memref<16x2x32xbf16, #tpu.memory_space<vmem>>, vector<1x2x32xbf16>
    %2 = vector.shape_cast %1 : vector<1x2x32xbf16> to vector<2x32xbf16>
    %c1 = arith.constant 1 : index
    %c0_2 = arith.constant 0 : index
    %c0_3 = arith.constant 0 : index
    %3 = vector.load %arg1[%c1, %c0_2, %c0_3] : memref<16x2x32xbf16, #tpu.memory_space<vmem>>, vector<1x2x32xbf16>
    %4 = vector.shape_cast %3 : vector<1x2x32xbf16> to vector<2x32xbf16>
    %c4 = arith.constant 4 : index
    %c0_4 = arith.constant 0 : index
    %c0_5 = arith.constant 0 : index
    %5 = vector.load %arg1[%c4, %c0_4, %c0_5] : memref<16x2x32xbf16, #tpu.memory_space<vmem>>, vector<1x2x32xbf16>
    %6 = vector.shape_cast %5 : vector<1x2x32xbf16> to vector<2x32xbf16>
    %c5 = arith.constant 5 : index
    %c0_6 = arith.constant 0 : index
    %c0_7 = arith.constant 0 : index
    %7 = vector.load %arg1[%c5, %c0_6, %c0_7] : memref<16x2x32xbf16, #tpu.memory_space<vmem>>, vector<1x2x32xbf16>
    %8 = vector.shape_cast %7 : vector<1x2x32xbf16> to vector<2x32xbf16>
    %9 = tpu.concatenate %0, %0, %0, %0, %2, %4, %0, %6, %8 in 1 : vector<2x32xbf16>, vector<2x32xbf16>, vector<2x32xbf16>, vector<2x32xbf16>, vector<2x32xbf16>, vector<2x32xbf16>, vector<2x32xbf16>, vector<2x32xbf16>, vector<2x32xbf16> -> vector<2x288xbf16>
    %c1_8 = arith.constant 1 : index
    %c0_9 = arith.constant 0 : index
    %c0_10 = arith.constant 0 : index
    %10 = vector.load %arg1[%c1_8, %c0_9, %c0_10] : memref<16x2x32xbf16, #tpu.memory_space<vmem>>, vector<1x2x32xbf16>
    %11 = vector.shape_cast %10 : vector<1x2x32xbf16> to vector<2x32xbf16>
    %c2 = arith.constant 2 : index
    %c0_11 = arith.constant 0 : index
    %c0_12 = arith.constant 0 : index
    %12 = vector.load %arg1[%c2, %c0_11, %c0_12] : memref<16x2x32xbf16, #tpu.memory_space<vmem>>, vector<1x2x32xbf16>
    %13 = vector.shape_cast %12 : vector<1x2x32xbf16> to vector<2x32xbf16>
    %c3 = arith.constant 3 : index
    %c0_13 = arith.constant 0 : index
    %c0_14 = arith.constant 0 : index
    %14 = vector.load %arg1[%c3, %c0_13, %c0_14] : memref<16x2x32xbf16, #tpu.memory_space<vmem>>, vector<1x2x32xbf16>
    %15 = vector.shape_cast %14 : vector<1x2x32xbf16> to vector<2x32xbf16>
    %c5_15 = arith.constant 5 : index
    %c0_16 = arith.constant 0 : index
    %c0_17 = arith.constant 0 : index
    %16 = vector.load %arg1[%c5_15, %c0_16, %c0_17] : memref<16x2x32xbf16, #tpu.memory_space<vmem>>, vector<1x2x32xbf16>
    %17 = vector.shape_cast %16 : vector<1x2x32xbf16> to vector<2x32xbf16>
    %c6 = arith.constant 6 : index
    %c0_18 = arith.constant 0 : index
    %c0_19 = arith.constant 0 : index
    %18 = vector.load %arg1[%c6, %c0_18, %c0_19] : memref<16x2x32xbf16, #tpu.memory_space<vmem>>, vector<1x2x32xbf16>
    %19 = vector.shape_cast %18 : vector<1x2x32xbf16> to vector<2x32xbf16>
    %c7 = arith.constant 7 : index
    %c0_20 = arith.constant 0 : index
    %c0_21 = arith.constant 0 : index
    %20 = vector.load %arg1[%c7, %c0_20, %c0_21] : memref<16x2x32xbf16, #tpu.memory_space<vmem>>, vector<1x2x32xbf16>
    %21 = vector.shape_cast %20 : vector<1x2x32xbf16> to vector<2x32xbf16>
    %22 = tpu.concatenate %0, %0, %0, %11, %13, %15, %17, %19, %21 in 1 : vector<2x32xbf16>, vector<2x32xbf16>, vector<2x32xbf16>, vector<2x32xbf16>, vector<2x32xbf16>, vector<2x32xbf16>, vector<2x32xbf16>, vector<2x32xbf16>, vector<2x32xbf16> -> vector<2x288xbf16>
    %c4_22 = arith.constant 4 : index
    %c0_23 = arith.constant 0 : index
    %c0_24 = arith.constant 0 : index
    %23 = vector.load %arg1[%c4_22, %c0_23, %c0_24] : memref<16x2x32xbf16, #tpu.memory_space<vmem>>, vector<1x2x32xbf16>
    %24 = vector.shape_cast %23 : vector<1x2x32xbf16> to vector<2x32xbf16>
    %c5_25 = arith.constant 5 : index
    %c0_26 = arith.constant 0 : index
    %c0_27 = arith.constant 0 : index
    %25 = vector.load %arg1[%c5_25, %c0_26, %c0_27] : memref<16x2x32xbf16, #tpu.memory_space<vmem>>, vector<1x2x32xbf16>
    %26 = vector.shape_cast %25 : vector<1x2x32xbf16> to vector<2x32xbf16>
    %c8 = arith.constant 8 : index
    %c0_28 = arith.constant 0 : index
    %c0_29 = arith.constant 0 : index
    %27 = vector.load %arg1[%c8, %c0_28, %c0_29] : memref<16x2x32xbf16, #tpu.memory_space<vmem>>, vector<1x2x32xbf16>
    %28 = vector.shape_cast %27 : vector<1x2x32xbf16> to vector<2x32xbf16>
    %c9 = arith.constant 9 : index
    %c0_30 = arith.constant 0 : index
    %c0_31 = arith.constant 0 : index
    %29 = vector.load %arg1[%c9, %c0_30, %c0_31] : memref<16x2x32xbf16, #tpu.memory_space<vmem>>, vector<1x2x32xbf16>
    %30 = vector.shape_cast %29 : vector<1x2x32xbf16> to vector<2x32xbf16>
    %c12 = arith.constant 12 : index
    %c0_32 = arith.constant 0 : index
    %c0_33 = arith.constant 0 : index
    %31 = vector.load %arg1[%c12, %c0_32, %c0_33] : memref<16x2x32xbf16, #tpu.memory_space<vmem>>, vector<1x2x32xbf16>
    %32 = vector.shape_cast %31 : vector<1x2x32xbf16> to vector<2x32xbf16>
    %c13 = arith.constant 13 : index
    %c0_34 = arith.constant 0 : index
    %c0_35 = arith.constant 0 : index
    %33 = vector.load %arg1[%c13, %c0_34, %c0_35] : memref<16x2x32xbf16, #tpu.memory_space<vmem>>, vector<1x2x32xbf16>
    %34 = vector.shape_cast %33 : vector<1x2x32xbf16> to vector<2x32xbf16>
    %35 = tpu.concatenate %0, %24, %26, %0, %28, %30, %0, %32, %34 in 1 : vector<2x32xbf16>, vector<2x32xbf16>, vector<2x32xbf16>, vector<2x32xbf16>, vector<2x32xbf16>, vector<2x32xbf16>, vector<2x32xbf16>, vector<2x32xbf16>, vector<2x32xbf16> -> vector<2x288xbf16>
    %c5_36 = arith.constant 5 : index
    %c0_37 = arith.constant 0 : index
    %c0_38 = arith.constant 0 : index
    %36 = vector.load %arg1[%c5_36, %c0_37, %c0_38] : memref<16x2x32xbf16, #tpu.memory_space<vmem>>, vector<1x2x32xbf16>
    %37 = vector.shape_cast %36 : vector<1x2x32xbf16> to vector<2x32xbf16>
    %c6_39 = arith.constant 6 : index
    %c0_40 = arith.constant 0 : index
    %c0_41 = arith.constant 0 : index
    %38 = vector.load %arg1[%c6_39, %c0_40, %c0_41] : memref<16x2x32xbf16, #tpu.memory_space<vmem>>, vector<1x2x32xbf16>
    %39 = vector.shape_cast %38 : vector<1x2x32xbf16> to vector<2x32xbf16>
    %c7_42 = arith.constant 7 : index
    %c0_43 = arith.constant 0 : index
    %c0_44 = arith.constant 0 : index
    %40 = vector.load %arg1[%c7_42, %c0_43, %c0_44] : memref<16x2x32xbf16, #tpu.memory_space<vmem>>, vector<1x2x32xbf16>
    %41 = vector.shape_cast %40 : vector<1x2x32xbf16> to vector<2x32xbf16>
    %c9_45 = arith.constant 9 : index
    %c0_46 = arith.constant 0 : index
    %c0_47 = arith.constant 0 : index
    %42 = vector.load %arg1[%c9_45, %c0_46, %c0_47] : memref<16x2x32xbf16, #tpu.memory_space<vmem>>, vector<1x2x32xbf16>
    %43 = vector.shape_cast %42 : vector<1x2x32xbf16> to vector<2x32xbf16>
    %c10 = arith.constant 10 : index
    %c0_48 = arith.constant 0 : index
    %c0_49 = arith.constant 0 : index
    %44 = vector.load %arg1[%c10, %c0_48, %c0_49] : memref<16x2x32xbf16, #tpu.memory_space<vmem>>, vector<1x2x32xbf16>
    %45 = vector.shape_cast %44 : vector<1x2x32xbf16> to vector<2x32xbf16>
    %c11 = arith.constant 11 : index
    %c0_50 = arith.constant 0 : index
    %c0_51 = arith.constant 0 : index
    %46 = vector.load %arg1[%c11, %c0_50, %c0_51] : memref<16x2x32xbf16, #tpu.memory_space<vmem>>, vector<1x2x32xbf16>
    %47 = vector.shape_cast %46 : vector<1x2x32xbf16> to vector<2x32xbf16>
    %c13_52 = arith.constant 13 : index
    %c0_53 = arith.constant 0 : index
    %c0_54 = arith.constant 0 : index
    %48 = vector.load %arg1[%c13_52, %c0_53, %c0_54] : memref<16x2x32xbf16, #tpu.memory_space<vmem>>, vector<1x2x32xbf16>
    %49 = vector.shape_cast %48 : vector<1x2x32xbf16> to vector<2x32xbf16>
    %c14 = arith.constant 14 : index
    %c0_55 = arith.constant 0 : index
    %c0_56 = arith.constant 0 : index
    %50 = vector.load %arg1[%c14, %c0_55, %c0_56] : memref<16x2x32xbf16, #tpu.memory_space<vmem>>, vector<1x2x32xbf16>
    %51 = vector.shape_cast %50 : vector<1x2x32xbf16> to vector<2x32xbf16>
    %c15 = arith.constant 15 : index
    %c0_57 = arith.constant 0 : index
    %c0_58 = arith.constant 0 : index
    %52 = vector.load %arg1[%c15, %c0_57, %c0_58] : memref<16x2x32xbf16, #tpu.memory_space<vmem>>, vector<1x2x32xbf16>
    %53 = vector.shape_cast %52 : vector<1x2x32xbf16> to vector<2x32xbf16>
    %54 = tpu.concatenate %37, %39, %41, %43, %45, %47, %49, %51, %53 in 1 : vector<2x32xbf16>, vector<2x32xbf16>, vector<2x32xbf16>, vector<2x32xbf16>, vector<2x32xbf16>, vector<2x32xbf16>, vector<2x32xbf16>, vector<2x32xbf16>, vector<2x32xbf16> -> vector<2x288xbf16>
    %55 = tpu.concatenate %9, %22, %35, %54 in 0 : vector<2x288xbf16>, vector<2x288xbf16>, vector<2x288xbf16>, vector<2x288xbf16> -> vector<8x288xbf16>
    %c0_59 = arith.constant 0 : index
    %c0_60 = arith.constant 0 : index
    %56 = vector.load %arg2[%c0_59, %c0_60] : memref<288x64xbf16, #tpu.memory_space<vmem>>, vector<288x64xbf16>
    %cst_61 = arith.constant dense<0.000000e+00> : vector<8x64xf32>
    %57 = tpu.matmul %55, %56, %cst_61 {dimension_numbers = #tpu.dot_dimension_numbers<[1], [0], [0], [1], [0, 0, 1, 1], [], []>} : vector<8x288xbf16>, vector<288x64xbf16>, vector<8x64xf32> -> vector<8x64xf32>
    %cst_62 = arith.constant 0.000000e+00 : f32
    %58 = vector.broadcast %cst_62 : f32 to vector<8x64xf32>
    %59 = arith.cmpf ogt, %57, %58 : vector<8x64xf32>
    %cst_63 = arith.constant 2.000000e-01 : f32
    %60 = vector.broadcast %cst_63 : f32 to vector<8x64xf32>
    %61 = arith.mulf %60, %57 : vector<8x64xf32>
    %62 = arith.select %59, %57, %61 : vector<8x64xi1>, vector<8x64xf32>
    %c0_64 = arith.constant 0 : index
    %c0_65 = arith.constant 0 : index
    %63 = vector.load %arg3[%c0_64, %c0_65] : memref<1x64xf32, #tpu.memory_space<vmem>>, vector<1x64xf32>
    %64 = vector.broadcast %63 : vector<1x64xf32> to vector<8x64xf32>
    %65 = arith.addf %62, %64 : vector<8x64xf32>
    %66 = arith.truncf %65 : vector<8x64xf32> to vector<8x64xbf16>
    %67 = vector.extract_strided_slice %66 {offsets = [0, 0], sizes = [2, 64], strides = [1, 1]} : vector<8x64xbf16> to vector<2x64xbf16>
    %68 = vector.extract_strided_slice %66 {offsets = [2, 0], sizes = [2, 64], strides = [1, 1]} : vector<8x64xbf16> to vector<2x64xbf16>
    %69 = vector.extract_strided_slice %66 {offsets = [4, 0], sizes = [2, 64], strides = [1, 1]} : vector<8x64xbf16> to vector<2x64xbf16>
    %70 = vector.extract_strided_slice %66 {offsets = [6, 0], sizes = [2, 64], strides = [1, 1]} : vector<8x64xbf16> to vector<2x64xbf16>
    %71 = tpu.concatenate %67, %68, %69, %70 in 1 : vector<2x64xbf16>, vector<2x64xbf16>, vector<2x64xbf16>, vector<2x64xbf16> -> vector<2x256xbf16>
    %c0_66 = arith.constant 0 : index
    %c0_67 = arith.constant 0 : index
    %72 = vector.load %arg4[%c0_66, %c0_67] : memref<256x128xbf16, #tpu.memory_space<vmem>>, vector<256x128xbf16>
    %cst_68 = arith.constant dense<0.000000e+00> : vector<2x128xf32>
    %73 = tpu.matmul %71, %72, %cst_68 {dimension_numbers = #tpu.dot_dimension_numbers<[1], [0], [0], [1], [0, 0, 1, 1], [], []>} : vector<2x256xbf16>, vector<256x128xbf16>, vector<2x128xf32> -> vector<2x128xf32>
    %cst_69 = arith.constant 0.000000e+00 : f32
    %74 = vector.broadcast %cst_69 : f32 to vector<2x128xf32>
    %75 = arith.cmpf ogt, %73, %74 : vector<2x128xf32>
    %cst_70 = arith.constant 2.000000e-01 : f32
    %76 = vector.broadcast %cst_70 : f32 to vector<2x128xf32>
    %77 = arith.mulf %76, %73 : vector<2x128xf32>
    %78 = arith.select %75, %73, %77 : vector<2x128xi1>, vector<2x128xf32>
    %c0_71 = arith.constant 0 : index
    %c0_72 = arith.constant 0 : index
    %79 = vector.load %arg5[%c0_71, %c0_72] : memref<1x128xf32, #tpu.memory_space<vmem>>, vector<1x128xf32>
    %80 = vector.broadcast %79 : vector<1x128xf32> to vector<2x128xf32>
    %81 = arith.addf %78, %80 : vector<2x128xf32>
    %82 = arith.truncf %81 : vector<2x128xf32> to vector<2x128xbf16>
    %c0_73 = arith.constant 0 : index
    %c0_74 = arith.constant 0 : index
    %83 = vector.load %arg6[%c0_73, %c0_74] : memref<128x128xbf16, #tpu.memory_space<vmem>>, vector<128x128xbf16>
    %cst_75 = arith.constant dense<0.000000e+00> : vector<2x128xf32>
    %84 = tpu.matmul %82, %83, %cst_75 {dimension_numbers = #tpu.dot_dimension_numbers<[1], [0], [0], [1], [0, 0, 1, 1], [], []>} : vector<2x128xbf16>, vector<128x128xbf16>, vector<2x128xf32> -> vector<2x128xf32>
    %cst_76 = arith.constant 0.000000e+00 : f32
    %85 = vector.broadcast %cst_76 : f32 to vector<2x128xf32>
    %86 = arith.cmpf ogt, %84, %85 : vector<2x128xf32>
    %cst_77 = arith.constant 2.000000e-01 : f32
    %87 = vector.broadcast %cst_77 : f32 to vector<2x128xf32>
    %88 = arith.mulf %87, %84 : vector<2x128xf32>
    %89 = arith.select %86, %84, %88 : vector<2x128xi1>, vector<2x128xf32>
    %c0_78 = arith.constant 0 : index
    %c0_79 = arith.constant 0 : index
    %90 = vector.load %arg7[%c0_78, %c0_79] : memref<1x128xf32, #tpu.memory_space<vmem>>, vector<1x128xf32>
    %91 = vector.broadcast %90 : vector<1x128xf32> to vector<2x128xf32>
    %92 = arith.addf %89, %91 : vector<2x128xf32>
    %93 = arith.truncf %92 : vector<2x128xf32> to vector<2x128xbf16>
    %c0_80 = arith.constant 0 : index
    %c0_81 = arith.constant 0 : index
    %94 = vector.load %arg8[%c0_80, %c0_81] : memref<128x128xbf16, #tpu.memory_space<vmem>>, vector<128x128xbf16>
    %cst_82 = arith.constant dense<0.000000e+00> : vector<2x128xf32>
    %95 = tpu.matmul %93, %94, %cst_82 {dimension_numbers = #tpu.dot_dimension_numbers<[1], [0], [0], [1], [0, 0, 1, 1], [], []>} : vector<2x128xbf16>, vector<128x128xbf16>, vector<2x128xf32> -> vector<2x128xf32>
    %cst_83 = arith.constant 0.000000e+00 : f32
    %96 = vector.broadcast %cst_83 : f32 to vector<2x128xf32>
    %97 = arith.maximumf %95, %96 : vector<2x128xf32>
    %c0_84 = arith.constant 0 : index
    %c0_85 = arith.constant 0 : index
    %98 = vector.load %arg9[%c0_84, %c0_85] : memref<1x128xf32, #tpu.memory_space<vmem>>, vector<1x128xf32>
    %99 = vector.broadcast %98 : vector<1x128xf32> to vector<2x128xf32>
    %100 = arith.addf %97, %99 : vector<2x128xf32>
    %101 = arith.truncf %100 : vector<2x128xf32> to vector<2x128xbf16>
    %c0_86 = arith.constant 0 : index
    %c0_87 = arith.constant 0 : index
    %102 = vector.load %arg10[%c0_86, %c0_87] : memref<128x10xbf16, #tpu.memory_space<vmem>>, vector<128x10xbf16>
    %cst_88 = arith.constant dense<0.000000e+00> : vector<2x10xf32>
    %103 = tpu.matmul %101, %102, %cst_88 {dimension_numbers = #tpu.dot_dimension_numbers<[1], [0], [0], [1], [0, 0, 1, 1], [], []>} : vector<2x128xbf16>, vector<128x10xbf16>, vector<2x10xf32> -> vector<2x10xf32>
    %c0_89 = arith.constant 0 : index
    %c0_90 = arith.constant 0 : index
    %104 = vector.load %arg11[%c0_89, %c0_90] : memref<1x10xf32, #tpu.memory_space<vmem>>, vector<1x10xf32>
    %105 = vector.broadcast %104 : vector<1x10xf32> to vector<2x10xf32>
    %106 = arith.addf %103, %105 : vector<2x10xf32>
    %c0_91 = arith.constant 0 : index
    %c0_92 = arith.constant 0 : index
    %107 = vector.load %arg12[%c0_91, %c0_92] : memref<2x10xf32, #tpu.memory_space<vmem>>, vector<2x10xf32>
    tpu.vector_store %arg12[%c0_91, %c0_92], %106 {strides = array<i32>} : memref<2x10xf32, #tpu.memory_space<vmem>>, vector<2x10xf32>,
    return
  }
  func.func @transform_0(%arg0: i32) -> (i32, i32, i32) {
    %c0_i32 = arith.constant 0 : i32
    %c0_i32_0 = arith.constant 0 : i32
    %c0_i32_1 = arith.constant 0 : i32
    %c0_i32_2 = arith.constant 0 : i32
    return %c0_i32, %c0_i32_0, %c0_i32_1 : i32, i32, i32
  }
  func.func @transform_1(%arg0: i32) -> (i32, i32) {
    %c0_i32 = arith.constant 0 : i32
    %c0_i32_0 = arith.constant 0 : i32
    %c0_i32_1 = arith.constant 0 : i32
    return %c0_i32, %c0_i32_0 : i32, i32
  }
  func.func @transform_2(%arg0: i32) -> (i32, i32) {
    %c0_i32 = arith.constant 0 : i32
    %c0_i32_0 = arith.constant 0 : i32
    %c0_i32_1 = arith.constant 0 : i32
    return %c0_i32, %c0_i32_0 : i32, i32
  }
  func.func @transform_3(%arg0: i32) -> (i32, i32) {
    %c0_i32 = arith.constant 0 : i32
    %c0_i32_0 = arith.constant 0 : i32
    %c0_i32_1 = arith.constant 0 : i32
    return %c0_i32, %c0_i32_0 : i32, i32
  }
  func.func @transform_4(%arg0: i32) -> (i32, i32) {
    %c0_i32 = arith.constant 0 : i32
    %c0_i32_0 = arith.constant 0 : i32
    %c0_i32_1 = arith.constant 0 : i32
    return %c0_i32, %c0_i32_0 : i32, i32
  }
  func.func @transform_5(%arg0: i32) -> (i32, i32) {
    %c0_i32 = arith.constant 0 : i32
    %c0_i32_0 = arith.constant 0 : i32
    %c0_i32_1 = arith.constant 0 : i32
    return %c0_i32, %c0_i32_0 : i32, i32
  }
  func.func @transform_6(%arg0: i32) -> (i32, i32) {
    %c0_i32 = arith.constant 0 : i32
    %c0_i32_0 = arith.constant 0 : i32
    %c0_i32_1 = arith.constant 0 : i32
    return %c0_i32, %c0_i32_0 : i32, i32
  }
  func.func @transform_7(%arg0: i32) -> (i32, i32) {
    %c0_i32 = arith.constant 0 : i32
    %c0_i32_0 = arith.constant 0 : i32
    %c0_i32_1 = arith.constant 0 : i32
    return %c0_i32, %c0_i32_0 : i32, i32
  }
  func.func @transform_8(%arg0: i32) -> (i32, i32) {
    %c0_i32 = arith.constant 0 : i32
    %c0_i32_0 = arith.constant 0 : i32
    %c0_i32_1 = arith.constant 0 : i32
    return %c0_i32, %c0_i32_0 : i32, i32
  }
  func.func @transform_9(%arg0: i32) -> (i32, i32) {
    %c0_i32 = arith.constant 0 : i32
    %c0_i32_0 = arith.constant 0 : i32
    %c0_i32_1 = arith.constant 0 : i32
    return %c0_i32, %c0_i32_0 : i32, i32
  }
  func.func @transform_10(%arg0: i32) -> (i32, i32) {
    %c0_i32 = arith.constant 0 : i32
    %c0_i32_0 = arith.constant 0 : i32
    %c0_i32_1 = arith.constant 0 : i32
    return %c0_i32, %c0_i32_0 : i32, i32
  }
  func.func @transform_11(%arg0: i32) -> (i32, i32) {
    %c0_i32 = arith.constant 0 : i32
    %c0_i32_0 = arith.constant 0 : i32
    %c0_i32_1 = arith.constant 0 : i32
    return %c0_i32, %c0_i32_0 : i32, i32
  }
}

</mosaic_0001>

<bundles_post_ra>
// kernel: triangle_net_forward.5
= control target key start
LH: loop header
LB: loop body
LE: loop exit
PB: predicated region body
PF: predicated region fallthrough
CT: control target
= control target key end

     0   :  { %s776_s12 = smov 0   ;;  %s778_s13 = smov 0   ;;  %s881_s0 = inlined_call_operand.vmem [shape: bf16[4,27], index: 0, kind: input, shape index: {}]   ;;  %s882_s1 = inlined_call_operand.vmem [shape: bf16[27,2048], index: 1, kind: input, shape index: {}]   ;;  %s883_s2 = inlined_call_operand.vmem [shape: f32[4,1], index: 2, kind: input, shape index: {}]   ;;  %s884_s3 = inlined_call_operand.vmem [shape: bf16[4,2048], index: 3, kind: output, shape index: {}]  }
   0x1   :  { %s780_s14 = smov 0  }
   0x2 LB: > { %s663_s15 = sadd.s32 4294967295, %s751_s14   ;;  %s793_s16 = sadd.s32 1, %s751_s14   ;;  %s751_s14 = sphi %s780_s14, %s887_s14   ;;  %s747_s13 = sphi %s778_s13, %s886_s13   ;;  %s743_s12 = sphi %s776_s12, %s885_s12  }
   0x3   : > { %s38_s17 = ssub.s32 %s751_s14, %s793_s16  ;;  %s41_s18 = sadd.s32 1, %s747_s13 }
   0x4   : > { %p39_p0 = scmp.eq.s32.totalorder %s38_s17, 0  ;;  %p48_p1 = scmp.ne.s32.totalorder %s747_s13, %s743_s12 }
   0x5   : > { %p49_p2 = scmp.eq.s32.totalorder %s751_s14, 0  ;;  %p666_p4 = scmp.ge.s32.totalorder %s751_s14, 2 }
   0x6   : > { %s802_s19 = scalar_select %p39_p0, %s747_s13, %s41_s18  }
   0x7   : > { %p50_p3 = por %p49_p2, %p48_p1  ;;  %127 = sbr.rel (%p666_p4) target bundleno = 26 (0x1a), region = 24 }
   0xe   : > { %130 = sbr.rel (!%p50_p3) target bundleno = 26 (0x1a), region = 28  ;;  %s132_s20 = sand.u32 (%p50_p3), 1, %s747_s13  }
   0xf   : > { %s700_s21 = sshll.u32 (%p50_p3), %s751_s14, 5  ;;  %s667_s22 = sshll.u32 (%p50_p3), %s132_s20, 7 }
  0x10   : > { %s810_s25 = scalar_lea.vmem (%p50_p3), %s882_s1, %s700_s21  ;;  %s134_s26 = scalar_lea.vmem (%p50_p3), [#allocation2], %s667_s22 }
  0x11   : > { %v150_v0 = vld [vmem:[%s810_s25] sm:$0xff] (%p50_p3)  ;;  %v152_v1 = vld [vmem:[%s810_s25 + $0x8] sm:$0xff] (%p50_p3)  ;;  %v154_v2 = vld [vmem:[%s810_s25 + $0x10] sm:$0xff] (%p50_p3) }
  0x12   : > { %151 = vst [vmem:[%s134_s26] sm:$0xff] (%p50_p3), %v150_v0  ;;  %153 = vst [vmem:[%s134_s26 + $0x8] sm:$0xff] (%p50_p3), %v152_v1  ;;  %v156_v3 = vld [vmem:[%s810_s25 + $0x18] sm:$0xff] (%p50_p3)  ;;  %v158_v4 = vld [vmem:[%s810_s25 + $0x40] sm:$0xff] (%p50_p3) }
  0x13   : > { %155 = vst [vmem:[%s134_s26 + $0x10] sm:$0xff] (%p50_p3), %v154_v2  ;;  %v160_v5 = vld [vmem:[%s810_s25 + $0x48] sm:$0xff] (%p50_p3)  ;;  %157 = vst [vmem:[%s134_s26 + $0x18] sm:$0xff] (%p50_p3), %v156_v3  ;;  %v162_v6 = vld [vmem:[%s810_s25 + $0x50] sm:$0xff] (%p50_p3) }
  0x14   : > { %159 = vst [vmem:[%s134_s26 + $0x20] sm:$0xff] (%p50_p3), %v158_v4  ;;  %161 = vst [vmem:[%s134_s26 + $0x28] sm:$0xff] (%p50_p3), %v160_v5  ;;  %v164_v7 = vld [vmem:[%s810_s25 + $0x58] sm:$0xff] (%p50_p3)  ;;  %v166_v8 = vld [vmem:[%s810_s25 + $0x80] sm:$0xff] (%p50_p3) }
  0x15   : > { %163 = vst [vmem:[%s134_s26 + $0x30] sm:$0xff] %v162_v6  ;;  %165 = vst [vmem:[%s134_s26 + $0x38] sm:$0xff] %v164_v7  ;;  %v168_v9 = vld [vmem:[%s810_s25 + $0x88] sm:$0xff]  ;;  %v170_v10 = vld [vmem:[%s810_s25 + $0x90] sm:$0xff] }
  0x16   : > { %167 = vst [vmem:[%s134_s26 + $0x40] sm:$0xff] %v166_v8  ;;  %v172_v11 = vld [vmem:[%s810_s25 + $0x98] sm:$0xff]  ;;  %169 = vst [vmem:[%s134_s26 + $0x48] sm:$0xff] %v168_v9  ;;  %v174_v12 = vld [vmem:[%s810_s25 + $0xc0] sm:$0xff] }
  0x17   : > { %171 = vst [vmem:[%s134_s26 + $0x50] sm:$0xff] %v170_v10  ;;  %173 = vst [vmem:[%s134_s26 + $0x58] sm:$0xff] %v172_v11  ;;  %v176_v13 = vld [vmem:[%s810_s25 + $0xc8] sm:$0xff]  ;;  %v178_v14 = vld [vmem:[%s810_s25 + $0xd0] sm:$0xff] }
  0x18   : > { %175 = vst [vmem:[%s134_s26 + $0x60] sm:$0xff] %v174_v12  ;;  %177 = vst [vmem:[%s134_s26 + $0x68] sm:$0xff] %v176_v13  ;;  %v180_v15 = vld [vmem:[%s810_s25 + $0xd8] sm:$0xff] }
  0x19   : > { %179 = vst [vmem:[%s134_s26 + $0x70] sm:$0xff] %v178_v14  ;;  %181 = vst [vmem:[%s134_s26 + $0x78] sm:$0xff] %v180_v15 }
  0x1a PF: > { %p670_p5 = scmp.ge.s32.totalorder %s751_s14, 1  ;;  %p186_p6 = scmp.lt.s32.totalorder %s751_s14, 3 }
  0x1c   : > { %p187_p7 = pnand %p670_p5, %p186_p6 }
  0x1d   : > { %s193_s27 = sand.u32 (!%p187_p7), 1, %s743_s12   ;;  %vm317_vm0 = vcmask (!%p187_p7), 1044480   ;;  %vm318_vm1 = vcmask (!%p187_p7), 1045504   ;;  %v753_v16 = vmov (!%p187_p7), 65535   ;;  %v754_v18 = vmov (!%p187_p7), 0   ;;  %s672_s7 = sshll.u32 (!%p187_p7), %s663_s15, 3 }
  0x1e   : > { %190 = sbr.rel (%p187_p7) target bundleno = 280 (0x118), region = 51  ;;  %s671_s28 = sshll.u32 (!%p187_p7), %s193_s27, 7  ;;  %v319_v17 = vsel (!%p187_p7), %vm317_vm0, 4294967295, %v753_v16  ;;  %377 = vmatprep.mubr.bf16.mxu0 (!%p187_p7), %v754_v18  ;;  %418 = vmatprep.mubr.bf16.mxu1 (!%p187_p7), %v754_v18  ;;  %v533_v19 = vld [vmem:[%s883_s2] sm:$0xf] (!%p187_p7)  ;;  %vm313_vm2 = vcmask (!%p187_p7), 220160   ;;  %v568_v62 = vlaneseq (!%p187_p7) }
  0x1f   : > { %728 = vset.pattern.permute.xlu0 (!%p187_p7), %v754_v18  ;;  %s837_s4 = scalar_lea.vmem (!%p187_p7), [#allocation2], %s671_s28  ;;  %v320_v28 = vsel (!%p187_p7), %vm318_vm1, %v319_v17, 0  ;;  %v224_v53 = vld [vmem:[%s881_s0] sm:$0x3] (!%p187_p7)  ;;  %v755_v63 = vmov (!%p187_p7), 1983009808  }
  0x20   : > { %v225_v20 = vld [vmem:[%s837_s4] sm:$0xff] (!%p187_p7)  ;;  %v226_v22 = vld [vmem:[%s837_s4 + $0x8] sm:$0xff] (!%p187_p7)  ;;  %536 = vperm.xlu0 (!%p187_p7), %728, %v533_v19   ;;  %v227_v35 = vld [vmem:[%s837_s4 + $0x10] sm:$0xff] (!%p187_p7)  ;;  %v566_v0 = vunpack.c.l.s4 (!%p187_p7), %v755_v63  ;;  %v569_v2 = vshrl.u32 (!%p187_p7), %v568_v62, 7  ;;  %p218_p8 = scmp.lt.s32.totalorder (!%p187_p7), %s672_s7, 15 }
  0x21   : > { %v229_v21 = vld [vmem:[%s837_s4 + $0x20] sm:$0xff] (!%p187_p7)  ;;  %v230_v24 = vld [vmem:[%s837_s4 + $0x28] sm:$0xff] (!%p187_p7)  ;;  %v231_v38 = vld [vmem:[%s837_s4 + $0x30] sm:$0xff] (!%p187_p7) }
  0x22   : > { %v675_v23 = vcombine.high (!%p187_p7), %v225_v20, %v229_v21  ;;  %v674_v25 = vcombine.low (!%p187_p7), %v225_v20, %v229_v21  ;;  %v233_v26 = vld [vmem:[%s837_s4 + $0x40] sm:$0xff] (!%p187_p7)  ;;  %v677_v29 = vcombine.high (!%p187_p7), %v226_v22, %v230_v24  ;;  %v676_v30 = vcombine.low (!%p187_p7), %v226_v22, %v230_v24  ;;  %v234_v32 = vld [vmem:[%s837_s4 + $0x48] sm:$0xff] (!%p187_p7)  ;;  %v228_v39 = vld [vmem:[%s837_s4 + $0x18] sm:$0xff] (!%p187_p7) }
  0x23   : > { %v237_v27 = vld [vmem:[%s837_s4 + $0x60] sm:$0x33] (!%p187_p7)  ;;  %v238_v33 = vld [vmem:[%s837_s4 + $0x68] sm:$0x33] (!%p187_p7)  ;;  %v232_v40 = vld [vmem:[%s837_s4 + $0x38] sm:$0xff] (!%p187_p7)  ;;  %v679_v48 = vcombine.high (!%p187_p7), %v227_v35, %v231_v38  ;;  %v678_v54 = vcombine.low (!%p187_p7), %v227_v35, %v231_v38  ;;  %v567_v6 = vunpack.c.0.s8 (!%p187_p7), %v566_v0 }
  0x24   : > { %v683_v31 = vcombine.high (!%p187_p7), %v233_v26, %v237_v27  ;;  %v682_v34 = vcombine.low (!%p187_p7), %v233_v26, %v237_v27  ;;  %345 = vmatprep.subr.bf16.mxu0 (!%p187_p7), %v675_v23  ;;  %v685_v36 = vcombine.high (!%p187_p7), %v234_v32, %v238_v33  ;;  %v684_v37 = vcombine.low (!%p187_p7), %v234_v32, %v238_v33  ;;  %v235_v43 = vld [vmem:[%s837_s4 + $0x50] sm:$0xff] (!%p187_p7)  ;;  %v236_v45 = vld [vmem:[%s837_s4 + $0x58] sm:$0xff] (!%p187_p7) }
  0x25   : > { %386 = vmatprep.subr.bf16.mxu1 %v677_v29  ;;  %346 = vmatpush1.bf16.msra.mxu0 %v674_v25  ;;  %v239_v44 = vld [vmem:[%s837_s4 + $0x70] sm:$0x33]  ;;  %v240_v49 = vld [vmem:[%s837_s4 + $0x78] sm:$0x33]  ;;  %v681_v50 = vcombine.high %v228_v39, %v232_v40  ;;  %v680_v56 = vcombine.low %v228_v39, %v232_v40  ;;  %v570_v22 = vsub.s32 %v567_v6, %v569_v2  ;;  %s889_s7 = smov (!%p218_p8, %s672_s7), 15 }
  0x26   : > { %v325_v41 = vand.u32 %v683_v31, %v320_v28  ;;  %v322_v42 = vand.u32 %v682_v34, %v320_v28  ;;  %387 = vmatpush1.bf16.msra.mxu1 %v676_v30  ;;  %v331_v46 = vand.u32 %v685_v36, %v320_v28  ;;  %v328_v47 = vand.u32 %v684_v37, %v320_v28  ;;  %s673_s8 = sshll.u32 %s889_s7, 1 }
  0x27   : > { %v687_v51 = vcombine.high %v235_v43, %v239_v44  ;;  %v689_v52 = vcombine.high %v236_v45, %v240_v49  ;;  %v686_v55 = vcombine.low %v235_v43, %v239_v44  ;;  %v688_v58 = vcombine.low %v236_v45, %v240_v49  ;;  %s221_s11 = scalar_lea.vmem %s884_s3, %s673_s8 }
  0x28   : > { %347 = vmatprep.subr.bf16.mxu0 %v325_v41  ;;  %388 = vmatprep.subr.bf16.mxu1 %v331_v46 }
  0x29   : > { %348 = vmatpush1.bf16.msra.mxu0 %v322_v42  ;;  %v337_v57 = vand.u32 %v687_v51, %v320_v28  ;;  %v343_v59 = vand.u32 %v689_v52, %v320_v28  ;;  %v334_v60 = vand.u32 %v686_v55, %v320_v28  ;;  %v340_v61 = vand.u32 %v688_v58, %v320_v28 }
  0x2a   : > { %389 = vmatpush1.bf16.msra.mxu1 %v328_v47  ;;  %427 = vmatprep.subr.bf16.mxu0 %v679_v48 }
  0x2b   : > { %468 = vmatprep.subr.bf16.mxu1 %v681_v50 }
  0x2c   : > { %690 = vmatmul.mubr.msk.bf16.vlgmr.msra.gmra.mrb[0].mxu0 %vm313_vm2, %v224_v53 }
  0x2d   : > { %691 = vmatmul.mubr.msk.bf16.vlgmr.msra.gmra.mrb[0].mxu1 %vm313_vm2, %v224_v53  ;;  %428 = vmatpush1.bf16.msra.mxu0 %v678_v54 }
  0x2e   : > { %469 = vmatpush1.bf16.msra.mxu1 %v680_v56  ;;  %429 = vmatprep.subr.bf16.mxu0 %v337_v57 }
  0x2f   : > { %470 = vmatprep.subr.bf16.mxu1 %v343_v59  ;;  %459 = vmatprep.mubr.bf16.mxu0 %v754_v18 }
  0x30   : > { %500 = vmatprep.mubr.bf16.mxu1 %v754_v18 }
  0x31   : > { %430 = vmatpush1.bf16.msra.mxu0 %v334_v60 }
  0x32   : > { %471 = vmatpush1.bf16.msra.mxu1 %v340_v61 }
  0x34   : > { %692 = vmatmul.mubr.msk.bf16.vlgmr.msra.gmra.mrb[4].mxu0 %vm313_vm2, %v224_v53 }
  0x35   : > { %693 = vmatmul.mubr.msk.bf16.vlgmr.msra.gmra.mrb[4].mxu1 %vm313_vm2, %v224_v53 }
  0x9f   : > { %v537_v9 = vpop.permute.xlu0 %536 }
  0xff   : > { %v379_v1 = vpop.f32.mrb[0].mxu0 }
 0x100   : > { %vm509_vm3 = vcmp.gt.f32.partialorder %v379_v1, 0.0  ;;  %v517_v3 = vmul.f32 0.2, %v379_v1  ;;  %v420_v4 = vpop.f32.mrb[0].mxu1  ;;  %v381_v5 = vpop.f32.mrb[1].mxu0 }
 0x101   : > { %vm511_vm4 = vcmp.gt.f32.partialorder %v420_v4, 0.0  ;;  %v519_v7 = vmul.f32 0.2, %v420_v4  ;;  %vm510_vm5 = vcmp.gt.f32.partialorder %v381_v5, 0.0  ;;  %v518_v8 = vmul.f32 0.2, %v381_v5 }
 0x102   : > { %v525_v10 = vsel %vm509_vm3, %v379_v1, %v517_v3  ;;  %v422_v11 = vpop.f32.mrb[1].mxu1  ;;  %v383_v12 = vpop.f32.mrb[2].mxu0 }
 0x103   : > { %v527_v13 = vsel %vm511_vm4, %v420_v4, %v519_v7  ;;  %v526_v14 = vsel %vm510_vm5, %v381_v5, %v518_v8  ;;  %vm512_vm6 = vcmp.gt.f32.partialorder %v422_v11, 0.0  ;;  %v520_v15 = vmul.f32 0.2, %v422_v11  ;;  %v424_v16 = vpop.f32.mrb[2].mxu1  ;;  %v384_v17 = vpop.f32.mrb[3].mxu0 }
 0x104   : > { %v539_v18 = vadd.f32 %v537_v9, %v525_v10  ;;  %v540_v19 = vadd.f32 %v537_v9, %v526_v14  ;;  %v541_v20 = vadd.f32 %v537_v9, %v527_v13  ;;  %v425_v21 = vpop.f32.mrb[3].mxu1 }
 0x105   : > { %v528_v23 = vsel %vm512_vm6, %v422_v11, %v520_v15 }
 0x106   : > { %v542_v24 = vadd.f32 %v537_v9, %v528_v23  ;;  %v694_v25 = vpack.c.bf16 %v540_v19, %v539_v18 }
 0x107   : > { %v461_v26 = vpop.f32.mrb[4].mxu0 }
 0x108   : > { %v695_v27 = vpack.c.bf16 %v542_v24, %v541_v20  ;;  %vm513_vm7 = vcmp.gt.f32.partialorder %v461_v26, 0.0  ;;  %v521_v28 = vmul.f32 0.2, %v461_v26  ;;  %v502_v29 = vpop.f32.mrb[4].mxu1  ;;  %v463_v30 = vpop.f32.mrb[5].mxu0  ;;  %v571_v31 = vrot.slane %v694_v25, %v570_v22 }
 0x109   : > { %vm515_vm8 = vcmp.gt.f32.partialorder %v502_v29, 0.0  ;;  %v523_v32 = vmul.f32 0.2, %v502_v29  ;;  %vm514_vm9 = vcmp.gt.f32.partialorder %v463_v30, 0.0  ;;  %v522_v33 = vmul.f32 0.2, %v463_v30 }
 0x10a   : > { %v529_v34 = vsel %vm513_vm7, %v461_v26, %v521_v28  ;;  %v504_v35 = vpop.f32.mrb[5].mxu1  ;;  %v578_v36 = vrot.slane %v695_v27, %v570_v22  ;;  %v465_v37 = vpop.f32.mrb[6].mxu0 }
 0x10b   : > { %v543_v38 = vadd.f32 %v537_v9, %v529_v34  ;;  %v531_v39 = vsel %vm515_vm8, %v502_v29, %v523_v32  ;;  %v530_v40 = vsel %vm514_vm9, %v463_v30, %v522_v33  ;;  %vm516_vm10 = vcmp.gt.f32.partialorder %v504_v35, 0.0  ;;  %v506_v41 = vpop.f32.mrb[6].mxu1  ;;  %v466_v42 = vpop.f32.mrb[7].mxu0 }
 0x10c   : > { %v544_v43 = vadd.f32 %v537_v9, %v530_v40  ;;  %v524_v44 = vmul.f32 0.2, %v504_v35  ;;  %v579_v45 = vcombine.low %v571_v31, %v578_v36  ;;  %v507_v46 = vpop.f32.mrb[7].mxu1  ;;  %v545_v47 = vadd.f32 %v537_v9, %v531_v39 }
 0x10e   : > { %v696_v48 = vpack.c.bf16 %v544_v43, %v543_v38  ;;  %v532_v49 = vsel %vm516_vm10, %v504_v35, %v524_v44  ;;  %599 = vst [vmem:[%s221_s11] sm:$0xff] %v579_v45 }
 0x10f   : > { %v546_v50 = vadd.f32 %v537_v9, %v532_v49 }
 0x110   : > { %v588_v51 = vrot.slane %v696_v48, %v570_v22 }
 0x111   : > { %v697_v52 = vpack.c.bf16 %v546_v50, %v545_v47 }
 0x113   : > { %v595_v53 = vrot.slane %v697_v52, %v570_v22 }
 0x115   : > { %v596_v54 = vcombine.low %v588_v51, %v595_v53 }
 0x117   : > { %600 = vst [vmem:[%s221_s11 + $0x8] sm:$0xff] %v596_v54 }
 0x118 PF: > { %p10_p9 = scmp.ge.s32.totalorder %s793_s16, 4   ;;  %s885_s12 = smov %s747_s13 }
 0x119   : > { %s886_s13 = smov %s802_s19  ;;  %s887_s14 = smov %s793_s16 }
 0x11a   :  { %12 = sbr.rel (!%p10_p9) target bundleno = 2 (0x2), region = 90 }

// kernel: triangle_net_forward.6
= control target key start
LH: loop header
LB: loop body
LE: loop exit
PB: predicated region body
PF: predicated region fallthrough
CT: control target
= control target key end

     0   :  { %v257_v1 = vmov 0   ;;  %vm80_vm0 = vcmask 1041408   ;;  %vm76_vm1 = vcmask 293888   ;;  %s324_s1 = inlined_call_operand.vmem [shape: bf16[36,512], index: 1, kind: input, shape index: {}]   ;;  %s325_s2 = inlined_call_operand.vmem [shape: f32[8,1], index: 2, kind: input, shape index: {}]   ;;  %s326_s0 = inlined_call_operand.vmem [shape: bf16[8,36], index: 0, kind: input, shape index: {}]   ;;  %s327_s3 = inlined_call_operand.vmem [shape: bf16[8,512], index: 3, kind: output, shape index: {}]  }
   0x1   :  { %v241_v0 = vld [vmem:[%s324_s1 + $0x4] ss:$16 sps:$4 sm:$0xff]   ;;  %125 = vmatprep.mubr.bf16.mxu0 %v257_v1  ;;  %166 = vmatprep.mubr.bf16.mxu1 %v257_v1  ;;  %v243_v2 = vld [vmem:[%s324_s1 + $0xc] ss:$16 sps:$4 sm:$0xff]   ;;  %v245_v3 = vld [vmem:[%s324_s1] ss:$16 sps:$4 sm:$0xff]  }
   0x2   :  { %240 = vset.pattern.permute.xlu0 %v257_v1  ;;  %93 = vmatprep.subr.bf16.mxu0 %v241_v0  ;;  %v246_v4 = vld [vmem:[%s324_s1 + $0x8] ss:$16 sps:$4 sm:$0xff]   ;;  %v247_v5 = vld [vmem:[%s324_s1 + $0x24] ss:$16 sps:$4 sm:$0xff]   ;;  %v249_v6 = vld [vmem:[%s324_s1 + $0x2c] ss:$16 sps:$4 sm:$0xff]  }
   0x3   :  { %134 = vmatprep.subr.bf16.mxu1 %v243_v2  ;;  %94 = vmatpush1.bf16.msra.mxu0 %v245_v3  ;;  %v251_v7 = vld [vmem:[%s324_s1 + $0x20] ss:$16 sps:$4 sm:$0xff]   ;;  %v252_v8 = vld [vmem:[%s324_s1 + $0x28] ss:$16 sps:$4 sm:$0xff]  }
   0x4   :  { %135 = vmatpush1.bf16.msra.mxu1 %v246_v4  ;;  %95 = vmatprep.subr.bf16.mxu0 %v247_v5  ;;  %v24_v9 = vld [vmem:[%s324_s1 + $0x40] sm:$0x33]  ;;  %v25_v10 = vld [vmem:[%s324_s1 + $0x48] sm:$0x33] }
   0x5   :  { %136 = vmatprep.subr.bf16.mxu1 %v249_v6  ;;  %v228_v11 = vcombine.high %v24_v9, %v24_v9  ;;  %v230_v12 = vcombine.high %v25_v10, %v25_v10  ;;  %v227_v13 = vcombine.low %v24_v9, %v24_v9  ;;  %v229_v14 = vcombine.low %v25_v10, %v25_v10  ;;  %v187_v15 = vld [vmem:[%s325_s2] sm:$0xff] }
   0x6   :  { %190 = vperm.xlu0 %240, %v187_v15   ;;  %v15_v18 = vld [vmem:[%s326_s0] sm:$0xf] }
   0x7   :  { %96 = vmatpush1.bf16.msra.mxu0 %v251_v7  ;;  %v82_v16 = vsel %vm80_vm0, %v227_v13, 0  ;;  %v88_v17 = vsel %vm80_vm0, %v229_v14, 0 }
   0x8   :  { %137 = vmatpush1.bf16.msra.mxu1 %v252_v8  ;;  %231 = vmatprep.subr.msk.bf16.mxu0 %vm80_vm0, %v228_v11 }
   0x9   :  { %233 = vmatprep.subr.msk.bf16.mxu1 %vm80_vm0, %v230_v12 }
   0xb   :  { %98 = vmatpush1.bf16.msra.mxu0 %v82_v16 }
   0xc   :  { %139 = vmatpush1.bf16.msra.mxu1 %v88_v17 }
   0xe   :  { %232 = vmatmul.mubr.msk.bf16.vlgmr.msra.gmra.mrb[0].mxu0 %vm76_vm1, %v15_v18 }
   0xf   :  { %234 = vmatmul.mubr.msk.bf16.vlgmr.msra.gmra.mrb[0].mxu1 %vm76_vm1, %v15_v18 }
  0x85   :  { %v191_v23 = vpop.permute.xlu0 %190 }
  0xe1   :  { %v127_v19 = vpop.f32.mrb[0].mxu0 }
  0xe2   :  { %v168_v20 = vpop.f32.mrb[0].mxu1  ;;  %vm175_vm2 = vcmp.gt.f32.partialorder %v127_v19, 0.0  ;;  %v179_v21 = vmul.f32 0.2, %v127_v19  ;;  %v129_v24 = vpop.f32.mrb[1].mxu0 }
  0xe3   :  { %vm177_vm3 = vcmp.gt.f32.partialorder %v168_v20, 0.0  ;;  %v181_v22 = vmul.f32 0.2, %v168_v20  ;;  %v170_v25 = vpop.f32.mrb[1].mxu1  ;;  %vm176_vm4 = vcmp.gt.f32.partialorder %v129_v24, 0.0  ;;  %v131_v29 = vpop.f32.mrb[2].mxu0 }
  0xe4   :  { %v183_v26 = vsel %vm175_vm2, %v127_v19, %v179_v21  ;;  %v180_v28 = vmul.f32 0.2, %v129_v24  ;;  %v172_v30 = vpop.f32.mrb[2].mxu1  ;;  %vm178_vm5 = vcmp.gt.f32.partialorder %v170_v25, 0.0  ;;  %v182_v31 = vmul.f32 0.2, %v170_v25 }
  0xe5   :  { %v185_v27 = vsel %vm177_vm3, %v168_v20, %v181_v22  ;;  %v193_v32 = vadd.f32 %v191_v23, %v183_v26  ;;  %v132_v33 = vpop.f32.mrb[3].mxu0  ;;  %v173_v34 = vpop.f32.mrb[3].mxu1 }
  0xe6   :  { %v184_v35 = vsel %vm176_vm4, %v129_v24, %v180_v28  ;;  %v195_v36 = vadd.f32 %v191_v23, %v185_v27  ;;  %v186_v37 = vsel %vm178_vm5, %v170_v25, %v182_v31 }
  0xe7   :  { %v194_v38 = vadd.f32 %v191_v23, %v184_v35  ;;  %v196_v39 = vadd.f32 %v191_v23, %v186_v37 }
  0xe9   :  { %v237_v40 = vpack.c.bf16 %v194_v38, %v193_v32  ;;  %v238_v41 = vpack.c.bf16 %v196_v39, %v195_v36 }
  0xeb   :  { %213 = vst [vmem:[%s327_s3] sm:$0xff] %v237_v40  ;;  %214 = vst [vmem:[%s327_s3 + $0x8] sm:$0xff] %v238_v41 }

// kernel: triangle_net_forward.7
= control target key start
LH: loop header
LB: loop body
LE: loop exit
PB: predicated region body
PF: predicated region fallthrough
CT: control target
= control target key end

     0   :  { %v187_v0 = vmov 0.0   ;;  %vm188_vm0 = vmmov 0   ;;  %v189_v2 = vmov 0   ;;  %vm62_vm1 = vcmask 1043456   ;;  %s237_s1 = inlined_call_operand.vmem [shape: bf16[72,128], index: 1, kind: input, shape index: {}]   ;;  %s238_s2 = inlined_call_operand.vmem [shape: f32[16,1], index: 2, kind: input, shape index: {}]   ;;  %s239_s0 = inlined_call_operand.vmem [shape: bf16[16,72], index: 0, kind: input, shape index: {}]   ;;  %s240_s3 = inlined_call_operand.vmem [shape: bf16[16,128], index: 3, kind: output, shape index: {}]  }
   0x1   :  { %163 = vmatprep.subr.bf16.mxu0 %v187_v0  ;;  %v181_v1 = vld [vmem:[%s237_s1] sm:$0xff]   ;;  %173 = vmatprep.mubr.msk.bf16.mxu0 %vm188_vm0, %v187_v0  ;;  %v182_v3 = vld [vmem:[%s237_s1 + $0x8] sm:$0xff]   ;;  %v183_v5 = vld [vmem:[%s237_s1 + $0x10] sm:$0xff]   ;;  %vm58_vm2 = vcmask 588800  }
   0x2   :  { %180 = vset.pattern.permute.xlu0 %v189_v2  ;;  %164 = vmatpush3.bf16.msra.mxu0 %v181_v1  ;;  %v113_v4 = vld [vmem:[%s238_s2] sm:$0xff]  ;;  %v114_v6 = vld [vmem:[%s238_s2 + $0x8] sm:$0xff]  ;;  %v184_v7 = vld [vmem:[%s237_s1 + $0x18] sm:$0xff]  }
   0x3   :  { %165 = vmatprep.subr.bf16.mxu0 %v187_v0  ;;  %117 = vperm.xlu0 %180, %v113_v4   ;;  %v185_v8 = vld [vmem:[%s237_s1 + $0x20] ss:$0 sps:$4 sm:$0xff]  }
   0x4   :  { %v64_v9 = vsel %vm62_vm1, %v185_v8, 0  ;;  %v186_v10 = vld [vmem:[%s239_s0] sm:$0xff]  }
   0x6   :  { %166 = vmatpush3.bf16.msra.mxu0 %v182_v3 }
   0x7   :  { %167 = vmatprep.subr.bf16.mxu0 %v187_v0  ;;  %122 = vperm.xlu0 %180, %v114_v6  }
   0xa   :  { %168 = vmatpush3.bf16.msra.mxu0 %v183_v5 }
   0xb   :  { %169 = vmatprep.subr.bf16.mxu0 %v187_v0 }
   0xe   :  { %170 = vmatpush3.bf16.msra.mxu0 %v184_v7 }
   0xf   :  { %171 = vmatprep.subr.bf16.mxu0 %v187_v0 }
  0x12   :  { %172 = vmatpush3.bf16.msra.mxu0 %v64_v9 }
  0x15   :  { %174 = vmatmul.mubr.msk.bf16.vlgmr.msra.gmra.mrb[0].mxu0 %vm58_vm2, %v186_v10 }
  0x82   :  { %v118_v11 = vpop.permute.xlu0 %117 }
  0x86   :  { %v123_v19 = vpop.permute.xlu0 %122 }
  0xe8   :  { %v100_v12 = vpop.f32.mrb[0].mxu0 }
  0xe9   :  { %vm107_vm3 = vcmp.gt.f32.partialorder %v100_v12, 0.0  ;;  %v109_v13 = vmul.f32 0.2, %v100_v12  ;;  %v175_v14 = vpop.f32.mrb[1].mxu0 }
  0xea   :  { %v103_v15 = vpop.f32.mrb[2].mxu0 }
  0xeb   :  { %v111_v16 = vsel %vm107_vm3, %v100_v12, %v109_v13  ;;  %vm108_vm4 = vcmp.gt.f32.partialorder %v103_v15, 0.0  ;;  %v110_v17 = vmul.f32 0.2, %v103_v15  ;;  %v176_v18 = vpop.f32.mrb[3].mxu0 }
  0xec   :  { %v125_v21 = vadd.f32 %v118_v11, %v111_v16 }
  0xed   :  { %v112_v20 = vsel %vm108_vm4, %v103_v15, %v110_v17 }
  0xee   :  { %v126_v22 = vadd.f32 %v123_v19, %v112_v20 }
  0xf0   :  { %v155_v23 = vpack.c.bf16 %v126_v22, %v125_v21 }
  0xf2   :  { %156 = vst [vmem:[%s240_s3] sm:$0xff] %v155_v23  }

// kernel: triangle_net_forward.8
= control target key start
LH: loop header
LB: loop body
LE: loop exit
PB: predicated region body
PF: predicated region fallthrough
CT: control target
= control target key end

     0   :  { %v289_v0 = vmov 0   ;;  %vm109_vm0 = vcmask 130048   ;;  %vm221_vm4 = vcmask 257024   ;;  %s377_s1 = inlined_call_operand.vmem [shape: bf16[144,32], index: 1, kind: input, shape index: {}]   ;;  %s378_s0 = inlined_call_operand.vmem [shape: bf16[32,144], index: 0, kind: input, shape index: {}]   ;;  %s379_s2 = inlined_call_operand.vmem [shape: f32[32,1], index: 2, kind: input, shape index: {}]   ;;  %s380_s3 = inlined_call_operand.vmem [shape: bf16[32,32], index: 3, kind: output, shape index: {}]  }
   0x1   :  { %116 = vmatprep.subr.bf16.mxu0 %v289_v0  ;;  %253 = vmatprep.subr.bf16.mxu1 %v289_v0  ;;  %v274_v1 = vld [vmem:[%s377_s1] sm:$0xff]   ;;  %v275_v2 = vld [vmem:[%s377_s1 + $0x8] sm:$0xff]   ;;  %v276_v3 = vld [vmem:[%s377_s1 + $0x10] sm:$0xff]  }
   0x2   :  { %273 = vset.pattern.permute.xlu1 %v289_v0  ;;  %272 = vset.pattern.permute.xlu0 %v289_v0  ;;  %v277_v4 = vld [vmem:[%s377_s1 + $0x18] sm:$0xff]   ;;  %v285_v5 = vld [vmem:[%s378_s0 + $0x4] ss:$8 sps:$4 sm:$0xff]   ;;  %v179_v7 = vld [vmem:[%s379_s2 + $0x10] sm:$0xff] }
   0x3   :  { %117 = vmatpush1.bf16.msra.mxu0 %v274_v1  ;;  %262 = vmatpush1.bf16.msra.mxu1 %v274_v1  ;;  %v288_v6 = vld [vmem:[%s378_s0 + $0x14] ss:$8 sps:$4 sm:$0xff]   ;;  %v177_v8 = vld [vmem:[%s379_s2] sm:$0xff]  ;;  %v178_v11 = vld [vmem:[%s379_s2 + $0x8] sm:$0xff] }
   0x4   :  { %118 = vmatprep.subr.bf16.mxu0 %v289_v0  ;;  %254 = vmatprep.subr.bf16.mxu1 %v289_v0  ;;  %v180_v9 = vld [vmem:[%s379_s2 + $0x18] sm:$0xff]  ;;  %v278_v10 = vld [vmem:[%s377_s1 + $0x20] sm:$0xff]   ;;  %v279_v12 = vld [vmem:[%s377_s1 + $0x28] sm:$0xff]  }
   0x5   :  { %243 = vmatprep.mubr.msk.bf16.mxu0 %vm109_vm0, %v285_v5  ;;  %193 = vperm.xlu1 %273, %v179_v7   ;;  %v280_v13 = vld [vmem:[%s377_s1 + $0x30] sm:$0xff]   ;;  %v281_v14 = vld [vmem:[%s377_s1 + $0x38] sm:$0xff]   ;;  %v282_v15 = vld [vmem:[%s377_s1 + $0x40] sm:$0xff]  }
   0x6   :  { %244 = vmatprep.mubr.msk.bf16.mxu1 %vm109_vm0, %v288_v6  ;;  %183 = vperm.xlu0 %272, %v177_v8   ;;  %v283_v16 = vld [vmem:[%s378_s0] ss:$8 sps:$4 sm:$0xff]   ;;  %v286_v17 = vld [vmem:[%s378_s0 + $0x10] ss:$8 sps:$4 sm:$0xff]  }
   0x7   :  { %119 = vmatpush1.bf16.msra.mxu0 %v275_v2  ;;  %263 = vmatpush1.bf16.msra.mxu1 %v275_v2 }
   0x8   :  { %120 = vmatprep.subr.bf16.mxu0 %v289_v0  ;;  %255 = vmatprep.subr.bf16.mxu1 %v289_v0 }
   0x9   :  { %198 = vperm.xlu1 %273, %v180_v9  }
   0xa   :  { %188 = vperm.xlu0 %272, %v178_v11  }
   0xb   :  { %121 = vmatpush1.bf16.msra.mxu0 %v276_v3  ;;  %264 = vmatpush1.bf16.msra.mxu1 %v276_v3 }
   0xc   :  { %122 = vmatprep.subr.bf16.mxu0 %v289_v0  ;;  %256 = vmatprep.subr.bf16.mxu1 %v289_v0 }
   0xf   :  { %123 = vmatpush1.bf16.msra.mxu0 %v277_v4  ;;  %265 = vmatpush1.bf16.msra.mxu1 %v277_v4 }
  0x10   :  { %124 = vmatprep.subr.bf16.mxu0 %v289_v0  ;;  %257 = vmatprep.subr.bf16.mxu1 %v289_v0 }
  0x13   :  { %125 = vmatpush1.bf16.msra.mxu0 %v278_v10  ;;  %266 = vmatpush1.bf16.msra.mxu1 %v278_v10 }
  0x14   :  { %126 = vmatprep.subr.bf16.mxu0 %v289_v0  ;;  %258 = vmatprep.subr.bf16.mxu1 %v289_v0 }
  0x17   :  { %127 = vmatpush1.bf16.msra.mxu0 %v279_v12  ;;  %267 = vmatpush1.bf16.msra.mxu1 %v279_v12 }
  0x18   :  { %128 = vmatprep.subr.bf16.mxu0 %v289_v0  ;;  %259 = vmatprep.subr.bf16.mxu1 %v289_v0 }
  0x1b   :  { %129 = vmatpush1.bf16.msra.mxu0 %v280_v13  ;;  %268 = vmatpush1.bf16.msra.mxu1 %v280_v13 }
  0x1c   :  { %130 = vmatprep.subr.bf16.mxu0 %v289_v0  ;;  %260 = vmatprep.subr.bf16.mxu1 %v289_v0 }
  0x1f   :  { %131 = vmatpush1.bf16.msra.mxu0 %v281_v14  ;;  %269 = vmatpush1.bf16.msra.mxu1 %v281_v14 }
  0x20   :  { %132 = vmatprep.subr.bf16.mxu0 %v289_v0  ;;  %261 = vmatprep.subr.bf16.mxu1 %v289_v0 }
  0x23   :  { %133 = vmatpush1.bf16.msra.mxu0 %v282_v15  ;;  %270 = vmatpush1.bf16.msra.mxu1 %v282_v15 }
  0x26   :  { %149 = vmatmul.mubr.bf16.vlgmr.msra.gmra.mrb[0].mxu0 %v283_v16  ;;  %157 = vmatmul.mubr.bf16.vlgmr.msra.gmra.mrb[0].mxu1 %v286_v17 }
  0x84   :  { %v194_v21 = vpop.permute.xlu1 %193 }
  0x85   :  { %v184_v18 = vpop.permute.xlu0 %183 }
  0x88   :  { %v199_v40 = vpop.permute.xlu1 %198 }
  0x89   :  { %v189_v38 = vpop.permute.xlu0 %188 }
  0xf9   :  { %v150_v19 = vpop.f32.mrb[0].mxu0  ;;  %v158_v20 = vpop.f32.mrb[0].mxu1 }
  0xfa   :  { %vm165_vm1 = vcmp.gt.f32.partialorder %v150_v19, 0.0  ;;  %v169_v22 = vmul.f32 0.2, %v150_v19  ;;  %vm167_vm2 = vcmp.gt.f32.partialorder %v158_v20, 0.0  ;;  %v171_v23 = vmul.f32 0.2, %v158_v20 }
  0xfb   :  { %v152_v24 = vpop.f32.mrb[1].mxu0  ;;  %v160_v25 = vpop.f32.mrb[1].mxu1 }
  0xfc   :  { %v173_v26 = vsel %vm165_vm1, %v150_v19, %v169_v22  ;;  %v175_v27 = vsel %vm167_vm2, %v158_v20, %v171_v23  ;;  %v153_v28 = vpop.f32.mrb[2].mxu0  ;;  %v161_v29 = vpop.f32.mrb[2].mxu1 }
  0xfd   :  { %v201_v30 = vadd.f32 %v184_v18, %v173_v26  ;;  %v203_v31 = vadd.f32 %v194_v21, %v175_v27  ;;  %vm166_vm3 = vcmp.gt.f32.partialorder %v153_v28, 0.0  ;;  %v170_v32 = vmul.f32 0.2, %v153_v28  ;;  %v155_v33 = vpop.f32.mrb[3].mxu0  ;;  %v163_v34 = vpop.f32.mrb[3].mxu1 }
  0xfe   :  { %vm168_vm5 = vcmp.gt.f32.partialorder %v161_v29, 0.0  ;;  %v172_v35 = vmul.f32 0.2, %v161_v29 }
  0xff   :  { %v249_v36 = vpack.c.bf16 %v201_v30, %v201_v30  ;;  %v251_v37 = vpack.c.bf16 %v203_v31, %v203_v31  ;;  %v174_v39 = vsel %vm166_vm3, %v153_v28, %v170_v32 }
 0x100   :  { %v202_v41 = vadd.f32 %v189_v38, %v174_v39  ;;  %v176_v42 = vsel %vm168_vm5, %v161_v29, %v172_v35 }
 0x101   :  { %222 = vst.msk [vmem:[%s380_s3] sm:$0xf] %vm221_vm4, %v249_v36  ;;  %224 = vst.msk [vmem:[%s380_s3 + $0x8] sm:$0xf] %vm221_vm4, %v251_v37  ;;  %v204_v43 = vadd.f32 %v199_v40, %v176_v42 }
 0x102   :  { %v250_v44 = vpack.c.bf16 %v202_v41, %v202_v41 }
 0x103   :  { %v252_v45 = vpack.c.bf16 %v204_v43, %v204_v43 }
 0x104   :  { %223 = vst.msk [vmem:[%s380_s3 + $0x4] sm:$0xf] %vm221_vm4, %v250_v44 }
 0x105   :  { %225 = vst.msk [vmem:[%s380_s3 + $0xc] sm:$0xf] %vm221_vm4, %v252_v45 }

// kernel: triangle_net_forward.9
= control target key start
LH: loop header
LB: loop body
LE: loop exit
PB: predicated region body
PF: predicated region fallthrough
CT: control target
= control target key end

     0   :  { %v58_v0 = vlaneseq  ;;  %v1459_v1 = vmov 1966171168   ;;  %s1460_s14 = smov 32   ;;  %s1461_s21 = smov 96   ;;  %v1463_v33 = vmov 0.0   ;;  %vm327_vm0 = vcmask 1040384   ;;  %s1882_s0 = inlined_call_operand.vmem [shape: bf16[16,2,32], index: 0, kind: input, shape index: {}]   ;;  %s1883_s1 = inlined_call_operand.vmem [shape: bf16[288,64], index: 1, kind: input, shape index: {}]   ;;  %s1884_s2 = inlined_call_operand.vmem [shape: f32[1,64], index: 2, kind: input, shape index: {}]   ;;  %s1885_s3 = inlined_call_operand.vmem [shape: bf16[256,128], index: 3, kind: input, shape index: {}]   ;;  %s1886_s4 = inlined_call_operand.vmem [shape: f32[1,128], index: 4, kind: input, shape index: {}]   ;;  %s1887_s5 = inlined_call_operand.vmem [shape: bf16[128,128], index: 5, kind: input, shape index: {}]   ;;  %s1888_s6 = inlined_call_operand.vmem [shape: f32[1,128], index: 6, kind: input, shape index: {}]   ;;  %s1889_s7 = inlined_call_operand.vmem [shape: bf16[128,128], index: 7, kind: input, shape index: {}]   ;;  %s1890_s8 = inlined_call_operand.vmem [shape: f32[1,128], index: 8, kind: input, shape index: {}]   ;;  %s1891_s9 = inlined_call_operand.vmem [shape: bf16[128,10], index: 9, kind: input, shape index: {}]   ;;  %s1892_s10 = inlined_call_operand.vmem [shape: f32[1,10], index: 10, kind: input, shape index: {}]   ;;  %s1893_s11 = inlined_call_operand.hbm [shape: f32[2,10], index: 11, kind: output, shape index: {}]  }
   0x1   :  { %v56_v2 = vunpack.c.l.s4 %v1459_v1  ;;  %v1156_v5 = vld.sshfl [vmem:[%s1882_s0 + $0x9] sm:$0x1 pattern:$0x75316420]  ;;  %v1377_v7 = vld [vmem:[%s1883_s1 + $0x40] sm:$0xff]   ;;  %v1381_v24 = vld [vmem:[%s1883_s1 + $0x50] sm:$0xff]   ;;  %1302 = vmatprep.subr.bf16.mxu1 %v1463_v33 }
   0x2   :  { %v59_v3 = vshrl.u32 %v58_v0, 7  ;;  %v1150_v6 = vld.sshfl [vmem:[%s1882_s0 + $0x3] sm:$0x1 pattern:$0x75316420]  ;;  %1228 = vmatprep.subr.bf16.mxu0 %v1377_v7  ;;  %v1379_v19 = vld [vmem:[%s1883_s1 + $0x48] sm:$0xff]  }
   0x3   :  { %v57_v4 = vunpack.c.0.s8 %v56_v2  ;;  %v1151_v9 = vld.sshfl [vmem:[%s1882_s0 + $0x6] sm:$0x1 pattern:$0x75316420]  ;;  %v1543_v10 = vld [vmem:[%s1882_s0 + $0x5] sm:$0x1] }
   0x4   :  { %v1144_v11 = vld.sshfl [vmem:[%s1882_s0 + $0x1] sm:$0x1 pattern:$0x75316420]  ;;  %v1380_v21 = vld [vmem:[%s1883_s1 + $0x8] sm:$0xff]   ;;  %v1382_v25 = vld [vmem:[%s1883_s1 + $0x10] sm:$0xff]  }
   0x5   :  { %v1535_v8 = vsub.s32 %v57_v4, %v59_v3  ;;  %v1378_v12 = vld [vmem:[%s1883_s1] sm:$0xff]   ;;  %v1162_v20 = vld.sshfl [vmem:[%s1882_s0 + $0xb] sm:$0x1 pattern:$0x75316420]  ;;  %v1383_v27 = vld [vmem:[%s1883_s1 + $0x58] sm:$0xff]  }
   0x6   :  { %v1145_v15 = vld.sshfl [vmem:[%s1882_s0 + $0x4] sm:$0x1 pattern:$0x75316420]  ;;  %1229 = vmatpush3.bf16.msra.mxu0 %v1378_v12  ;;  %v1155_v26 = vld [vmem:[%s1882_s0 + $0xd] sm:$0x1] }
   0x7   :  { %v1552_v13 = vrot.slane %v1156_v5, %v1535_v8  ;;  %v117_v14 = vrot.slane %v1150_v6, %v1535_v8  ;;  %v151_v16 = vrot.slane %v1151_v9, %v1535_v8  ;;  %v61_v17 = vrot.slane %v1144_v11, %v1535_v8  ;;  %1230 = vmatprep.subr.bf16.mxu0 %v1379_v19  ;;  %s1462_s30 = smov 64   ;;  %v1157_v29 = vld.sshfl [vmem:[%s1882_s0 + $0xc] sm:$0x1 pattern:$0x75316420]  ;;  %v1384_v31 = vld [vmem:[%s1883_s1 + $0x18] sm:$0xff]  }
   0x8   :  { %v127_v18 = vrot.slane %v1543_v10, %v1535_v8  ;;  %v78_v23 = vrot.slane %v1145_v15, %v1535_v8  ;;  %v260_v28 = vrot.slane %v1162_v20, %v1535_v8  ;;  %v1149_v30 = vld [vmem:[%s1882_s0 + $0x7] sm:$0x1]  ;;  %v204_v34 = vrot.slane %v1157_v29, %v1535_v8  ;;  %v1163_v39 = vld.sshfl [vmem:[%s1882_s0 + $0xe] sm:$0x1 pattern:$0x75316420] }
   0x9   :  { %188 = vrot.lane.b32.xlu1 %v1552_v13, %s1460_s14  ;;  %118 = vrot.lane.b32.xlu0 %v117_v14, %s1460_s14  ;;  %v1385_v32 = vld [vmem:[%s1883_s1 + $0x60] sm:$0xff]   ;;  %v270_v35 = vrot.slane %v1155_v26, %v1535_v8  ;;  %v315_v36 = vrot.slane %v1149_v30, 7  ;;  %v320_v37 = vrot.slane %v1155_v26, 6  ;;  %v1387_v40 = vld [vmem:[%s1883_s1 + $0x68] sm:$0xff]   ;;  %v234_v42 = vrot.slane %v1149_v30, %v1535_v8 }
   0xa   :  { %v134_v22 = vrot.slane %v127_v18, %v1535_v8  ;;  %1231 = vmatpush3.bf16.msra.mxu0 %v1380_v21  ;;  %v1386_v38 = vld [vmem:[%s1883_s1 + $0x20] sm:$0xff]   ;;  %v1388_v45 = vld [vmem:[%s1883_s1 + $0x28] sm:$0xff]   ;;  %vm1464_vm1 = vmmov 0   ;;  %v1389_v46 = vld [vmem:[%s1883_s1 + $0x70] sm:$0xff]   ;;  %vm334_vm2 = vcmask 1041408   ;;  %v294_v51 = vrot.slane %v1163_v39, %v1535_v8 }
   0xb   :  { %1232 = vmatprep.subr.bf16.mxu0 %v1381_v24  ;;  %v277_v41 = vrot.slane %v270_v35, %v1535_v8  ;;  %v333_v43 = vsel %vm327_vm0, %v1543_v10, %v315_v36  ;;  %v1391_v44 = vld [vmem:[%s1883_s1 + $0x80] sm:$0xff]   ;;  %1306 = vmatprep.mubr.msk.bf16.mxu1 %vm1464_vm1, %v1463_v33  ;;  %v1394_v47 = vld [vmem:[%s1883_s1 + $0x88] sm:$0xff]   ;;  %v241_v50 = vrot.slane %v234_v42, %v1535_v8  ;;  %v1390_v52 = vld [vmem:[%s1883_s1 + $0x30] sm:$0xff]   ;;  %vm341_vm3 = vcmask 1042432  }
   0xc   :  { %1303 = vmatpush3.bf16.msra.mxu1 %v1391_v44  ;;  %v1161_v48 = vld [vmem:[%s1882_s0 + $0xf] sm:$0x1]  ;;  %v340_v49 = vsel %vm334_vm2, %v333_v43, %v320_v37  ;;  %v1392_v54 = vld [vmem:[%s1883_s1 + $0x78] sm:$0xff]   ;;  %vm81_vm4 = vcmask 261120  }
   0xd   :  { %152 = vrot.lane.b32.xlu0 %v151_v16, %s1461_s21  ;;  %62 = vrot.lane.b32.xlu1 %v61_v17, %s1460_s14  ;;  %v326_v53 = vrot.slane %v1161_v48, 5  ;;  %v1393_v56 = vld [vmem:[%s1883_s1 + $0x38] sm:$0xff]  }
   0xe   :  { %1233 = vmatpush3.bf16.msra.mxu0 %v1382_v25  ;;  %1304 = vmatprep.subr.bf16.mxu1 %v1463_v33 }
   0xf   :  { %1234 = vmatprep.subr.bf16.mxu0 %v1383_v27  ;;  %v349_v55 = vsel %vm341_vm3, %v340_v49, %v326_v53 }
  0x10   :  { %1305 = vmatpush3.bf16.msra.mxu1 %v1394_v47 }
  0x11   :  { %135 = vrot.lane.b32.xlu0 %v134_v22, %s1462_s30  ;;  %171 = vrot.lane.b32.xlu1 %v78_v23, %s1460_s14 }
  0x12   :  { %1235 = vmatpush3.bf16.msra.mxu0 %v1384_v31 }
  0x13   :  { %1236 = vmatprep.subr.bf16.mxu0 %v1385_v32  ;;  %1307 = vmatmul.mubr.msk.bf16.vlgmr.msra.gmra.mrb[0].mxu1 %vm81_vm4, %v349_v55 }
  0x15   :  { %261 = vrot.lane.b32.xlu0 %v260_v28, %s1460_s14  ;;  %101 = vrot.lane.b32.xlu1 %v61_v17, %s1461_s21 }
  0x16   :  { %1237 = vmatpush3.bf16.msra.mxu0 %v1386_v38 }
  0x17   :  { %1238 = vmatprep.subr.bf16.mxu0 %v1387_v40 }
  0x19   :  { %205 = vrot.lane.b32.xlu0 %v204_v34, %s1461_s21  ;;  %225 = vrot.lane.b32.xlu1 %v151_v16, %s1460_s14 }
  0x1a   :  { %1239 = vmatpush3.bf16.msra.mxu0 %v1388_v45 }
  0x1b   :  { %1240 = vmatprep.subr.bf16.mxu0 %v1389_v46 }
  0x1d   :  { %278 = vrot.lane.b32.xlu0 %v277_v41, %s1462_s30  ;;  %79 = vrot.lane.b32.xlu1 %v78_v23, %s1461_s21 }
  0x1e   :  { %1241 = vmatpush3.bf16.msra.mxu0 %v1390_v52 }
  0x1f   :  { %1242 = vmatprep.subr.bf16.mxu0 %v1392_v54 }
  0x21   :  { %242 = vrot.lane.b32.xlu0 %v241_v50, %s1462_s30  ;;  %295 = vrot.lane.b32.xlu1 %v294_v51, %s1461_s21 }
  0x22   :  { %1243 = vmatpush3.bf16.msra.mxu0 %v1393_v56 }
  0x23   :  { %1310 = vmatprep.subr.bf16.mxu0 %v1463_v33 }
  0x25   :  { %244 = vrot.lane.b32.xlu0 %v1552_v13, %s1461_s21 }
  0x26   :  { %16 = vsyncpa [#allocation3], 0  ;;  %v1146_v63 = vld [vmem:[%s1882_s0 + $0x2] sm:$0x1]  ;;  %v40_v2 = vld [vmem:[%s1882_s0] sm:$0x1] }
  0x27   :  { %vm83_vm5 = vcmask 523264   ;;  %v1152_v3 = vld [vmem:[%s1882_s0 + $0x8] sm:$0x1]  ;;  %vm85_vm6 = vcmask 785408   ;;  %v1158_v14 = vld [vmem:[%s1882_s0 + $0xa] sm:$0x1] }
  0x28   :  { %v1395_v48 = vld [vmem:[%s1885_s3 + $0x40] sm:$0xff]   ;;  %v1397_v50 = vld [vmem:[%s1885_s3 + $0x48] sm:$0xff]   ;;  %v1399_v52 = vld [vmem:[%s1885_s3 + $0x50] sm:$0xff]   ;;  %s1465_s13 = smov [#allocation2]   ;;  %vm1125_vm10 = vcmask 74752  }
  0x29   :  { %v1396_v49 = vld [vmem:[%s1885_s3] sm:$0xff]   ;;  %1253 = vmatprep.subr.bf16.mxu1 %v1395_v48  ;;  %v1398_v51 = vld [vmem:[%s1885_s3 + $0x8] sm:$0xff]   ;;  %v1400_v53 = vld [vmem:[%s1885_s3 + $0x10] sm:$0xff]  }
  0x2a   :  { %1254 = vmatpush3.bf16.msra.mxu1 %v1396_v49  ;;  %v1401_v54 = vld [vmem:[%s1885_s3 + $0x58] sm:$0xff]   ;;  %v1403_v56 = vld [vmem:[%s1885_s3 + $0x60] sm:$0xff]  }
  0x2b   :  { %1255 = vmatprep.subr.bf16.mxu1 %v1397_v50  ;;  %v1402_v55 = vld [vmem:[%s1885_s3 + $0x18] sm:$0xff]   ;;  %v1431_v49 = vld [vmem:[%s1891_s9 + $0x20] sm:$0xff]   ;;  %v1432_v50 = vld [vmem:[%s1891_s9 + $0x28] sm:$0xff]  }
  0x2c   :  { %v1430_v48 = vld [vmem:[%s1891_s9 + $0x18] sm:$0xff]  }
  0x2e   :  { %1256 = vmatpush3.bf16.msra.mxu1 %v1398_v51 }
  0x2f   :  { %1257 = vmatprep.subr.bf16.mxu1 %v1399_v52 }
  0x32   :  { %1258 = vmatpush3.bf16.msra.mxu1 %v1400_v53  ;;  %v1209_v53 = vld [vmem:[%s1888_s6] ss:$0 sm:$0xff] }
  0x33   :  { %1259 = vmatprep.subr.bf16.mxu1 %v1401_v54 }
  0x36   :  { %1260 = vmatpush3.bf16.msra.mxu1 %v1402_v55 }
  0x37   :  { %1261 = vmatprep.subr.bf16.mxu1 %v1403_v56 }
  0x7b   :  { %v189_v57 = vpop.permute.xlu1 %188  ;;  %v119_v58 = vpop.permute.xlu0 %118 }
  0x7c   :  { %v158_v4 = vsel %vm81_vm4, %v1146_v63, %v119_v58  ;;  %v213_v9 = vsel %vm81_vm4, %v1152_v3, %v189_v57  ;;  %v1404_v57 = vld [vmem:[%s1885_s3 + $0x20] sm:$0xff]   ;;  %v1405_v58 = vld [vmem:[%s1885_s3 + $0x68] sm:$0xff]   ;;  %v1410_v63 = vld [vmem:[%s1885_s3 + $0x38] sm:$0xff]  }
  0x7d   :  { %v214_v17 = vsel %vm83_vm5, %v213_v9, 0  ;;  %1262 = vmatpush3.bf16.msra.mxu1 %v1404_v57  ;;  %v1412_v9 = vld [vmem:[%s1887_s5 + $0x8] sm:$0xff]  }
  0x7e   :  { %1263 = vmatprep.subr.bf16.mxu1 %v1405_v58 }
  0x7f   :  { %v153_v59 = vpop.permute.xlu0 %152  ;;  %v63_v60 = vpop.permute.xlu1 %62 }
  0x80   :  { %v89_v8 = vsel %vm81_vm4, %v40_v2, %v63_v60  ;;  %v1407_v60 = vld [vmem:[%s1885_s3 + $0x70] sm:$0xff]  }
  0x81   :  { %v90_v12 = vsel %vm83_vm5, %v89_v8, 0  ;;  %v1183_v8 = vld [vmem:[%s1884_s2] ss:$0 sm:$0xff]  ;;  %s1133_s2 = sshll.u32 %s1465_s13, 4  ;;  %s1134_s2 = int_to_ptr.vmem [resolvable:$true] %s1133_s2 }
  0x82   :  { %p1440_p1 = scmp.lt.s32.totalorder %s1134_s2, %s1134_s2 }
  0x83   :  { %v136_v61 = vpop.permute.xlu0 %135  ;;  %v172_v62 = vpop.permute.xlu1 %171 }
  0x84   :  { %v160_v5 = vsel %vm83_vm5, %v158_v4, %v136_v61  ;;  %v208_v13 = vsel %vm81_vm4, 0, %v172_v62  ;;  %v1409_v62 = vld [vmem:[%s1885_s3 + $0x78] sm:$0xff]  }
  0x85   :  { %v162_v11 = vsel %vm85_vm6, %v160_v5, %v153_v59  ;;  %v209_v22 = vsel %vm83_vm5, %v208_v13, %v136_v61  ;;  %v1406_v59 = vld [vmem:[%s1885_s3 + $0x28] sm:$0xff]   ;;  %v1408_v61 = vld [vmem:[%s1885_s3 + $0x30] sm:$0xff]  }
  0x86   :  { %v314_v20 = vrot.slane %v162_v11, 7  ;;  %v210_v31 = vsel %vm85_vm6, %v209_v22, 0  ;;  %1264 = vmatpush3.bf16.msra.mxu1 %v1406_v59  ;;  %v1413_v13 = vld [vmem:[%s1887_s5 + $0x10] sm:$0xff]  }
  0x87   :  { %v262_v0 = vpop.permute.xlu0 %261  ;;  %v102_v1 = vpop.permute.xlu1 %101  ;;  %v318_v40 = vrot.slane %v210_v31, 6  ;;  %1265 = vmatprep.subr.bf16.mxu1 %v1407_v60  ;;  %v1423_v31 = vld [vmem:[%s1889_s7 + $0x20] sm:$0xff]   ;;  %v1433_v60 = vld [vmem:[%s1891_s9 + $0x30] sm:$0xff]  }
  0x88   :  { %v155_v18 = vsel %vm85_vm6, 0, %v102_v1  ;;  %v306_v23 = vsel %vm81_vm4, %v1158_v14, %v262_v0 }
  0x89   :  { %v313_v24 = vrot.slane %v155_v18, 7  ;;  %v1415_v18 = vld [vmem:[%s1887_s5 + $0x20] sm:$0xff]  }
  0x8a   :  { %1266 = vmatpush3.bf16.msra.mxu1 %v1408_v61  ;;  %v1434_v61 = vld [vmem:[%s1891_s9 + $0x38] sm:$0xff]  }
  0x8b   :  { %v206_v6 = vpop.permute.xlu0 %205  ;;  %v226_v7 = vpop.permute.xlu1 %225  ;;  %v329_v36 = vsel %vm327_vm0, 0, %v313_v24  ;;  %1267 = vmatprep.subr.bf16.mxu1 %v1409_v62  ;;  %v1416_v24 = vld [vmem:[%s1887_s5 + $0x28] sm:$0xff]  }
  0x8c   :  { %v216_v21 = vsel %vm85_vm6, %v214_v17, %v206_v6  ;;  %v299_v34 = vsel %vm81_vm4, %v1543_v10, %v226_v7  ;;  %v336_v43 = vsel %vm334_vm2, %v329_v36, %v318_v40  ;;  %v1411_v6 = vld [vmem:[%s1887_s5] sm:$0xff]   ;;  %v1414_v17 = vld [vmem:[%s1887_s5 + $0x18] sm:$0xff]  }
  0x8d   :  { %v319_v29 = vrot.slane %v216_v21, 6  ;;  %v1200_v40 = vld [vmem:[%s1886_s4] ss:$0 sm:$0xff] }
  0x8e   :  { %1268 = vmatpush3.bf16.msra.mxu1 %v1410_v63  ;;  %v1218_v63 = vld [vmem:[%s1890_s8] ss:$0 sm:$0xff]  ;;  %s1435_s8 = scalar_lea.vmem %s1134_s2, 32 }
  0x8f   :  { %v279_v15 = vpop.permute.xlu0 %278  ;;  %v80_v16 = vpop.permute.xlu1 %79  ;;  %1330 = vmatprep.subr.bf16.mxu1 %v1463_v33  ;;  %p1436_p0 = scmp.ne.s32.totalorder %s1134_s2, %s1435_s8  ;;  %p1441_p2 = scmp.lt.s32.totalorder %s1435_s8, %s1435_s8 }
  0x90   :  { %v92_v19 = vsel %vm85_vm6, %v90_v12, %v80_v16  ;;  %v308_v25 = vsel %vm83_vm5, %v306_v23, %v279_v15 }
  0x91   :  { %v331_v26 = vsel %vm327_vm0, %v92_v19, %v314_v20  ;;  %p1442_p3 = por %p1441_p2, %p1440_p1 }
  0x92   :  { %v338_v35 = vsel %vm334_vm2, %v331_v26, %v319_v29  ;;  %v1418_v26 = vld [vmem:[%s1887_s5 + $0x38] sm:$0xff]   ;;  %v1421_v29 = vld [vmem:[%s1889_s7 + $0x10] sm:$0xff]  }
  0x93   :  { %v243_v27 = vpop.permute.xlu0 %242  ;;  %v296_v28 = vpop.permute.xlu1 %295  ;;  %p1443_p4 = pnand %p1442_p3, %p1436_p0 }
  0x94   :  { %v310_v30 = vsel %vm85_vm6, %v308_v25, %v296_v28  ;;  %v301_v37 = vsel %vm83_vm5, %v299_v34, %v243_v27  ;;  %v1417_v25 = vld [vmem:[%s1887_s5 + $0x30] sm:$0xff]   ;;  %v1419_v27 = vld [vmem:[%s1889_s7] sm:$0xff]   ;;  %v1420_v28 = vld [vmem:[%s1889_s7 + $0x8] sm:$0xff]  }
  0x95   :  { %v325_v32 = vrot.slane %v310_v30, 5  ;;  %v1422_v30 = vld [vmem:[%s1889_s7 + $0x18] sm:$0xff]  }
  0x97   :  { %v245_v38 = vpop.permute.xlu0 %244  ;;  %v346_v39 = vsel %vm341_vm3, %v338_v35, %v325_v32  ;;  %v1424_v32 = vld [vmem:[%s1889_s7 + $0x28] sm:$0xff]  }
  0x98   :  { %v303_v41 = vsel %vm85_vm6, %v301_v37, %v245_v38  ;;  %528 = vmatprep.mubr.bf16.mxu0 %v346_v39 }
  0x99   :  { %v324_v42 = vrot.slane %v303_v41, 5 }
  0x9b   :  { %v343_v44 = vsel %vm341_vm3, %v336_v43, %v324_v42 }
  0x9c   :  { %529 = vmatmul.mubr.bf16.vlgmr.msra.gmra.mrb[0].mxu0 %v343_v44  ;;  %v1425_v44 = vld [vmem:[%s1889_s7 + $0x30] sm:$0xff]  }
  0x9d   :  { %1326 = vmatprep.mubr.msk.bf16.mxu0 %vm1464_vm1, %v1463_v33  ;;  %1311 = vmatpush3.bf16.msra.mxu0 %v1411_v6 }
  0x9e   :  { %1312 = vmatprep.subr.bf16.mxu0 %v1463_v33 }
  0xa1   :  { %1313 = vmatpush3.bf16.msra.mxu0 %v1412_v9 }
  0xa2   :  { %1314 = vmatprep.subr.bf16.mxu0 %v1463_v33 }
  0xa5   :  { %1315 = vmatpush3.bf16.msra.mxu0 %v1413_v13 }
  0xa6   :  { %1316 = vmatprep.subr.bf16.mxu0 %v1463_v33 }
  0xa9   :  { %1317 = vmatpush3.bf16.msra.mxu0 %v1414_v17 }
  0xaa   :  { %1318 = vmatprep.subr.bf16.mxu0 %v1463_v33 }
  0xad   :  { %1319 = vmatpush3.bf16.msra.mxu0 %v1415_v18 }
  0xae   :  { %1320 = vmatprep.subr.bf16.mxu0 %v1463_v33 }
  0xb1   :  { %1321 = vmatpush3.bf16.msra.mxu0 %v1416_v24 }
  0xb2   :  { %1322 = vmatprep.subr.bf16.mxu0 %v1463_v33 }
  0xb5   :  { %1323 = vmatpush3.bf16.msra.mxu0 %v1417_v25 }
  0xb6   :  { %1324 = vmatprep.subr.bf16.mxu0 %v1463_v33 }
  0xb9   :  { %1325 = vmatpush3.bf16.msra.mxu0 %v1418_v26 }
  0xba   :  { %1350 = vmatprep.subr.bf16.mxu0 %v1463_v33 }
  0xe6   :  { %v570_v10 = vpop.f32.mrb[0].mxu1 }
  0xe7   :  { %v1308_v45 = vpop.f32.mrb[1].mxu1 }
  0xe8   :  { %v573_v46 = vpop.f32.mrb[2].mxu1  ;;  %v1427_v45 = vld [vmem:[%s1891_s9] sm:$0xff]  }
  0xe9   :  { %v1309_v47 = vpop.f32.mrb[3].mxu1  ;;  %v1428_v46 = vld [vmem:[%s1891_s9 + $0x8] sm:$0xff]  }
  0xea   :  { %v1429_v47 = vld [vmem:[%s1891_s9 + $0x10] sm:$0xff]  }
 0x16f   :  { %v1244_v0 = vpop.f32.mrb[0].mxu0 }
 0x170   :  { %v1245_v1 = vpop.f32.mrb[1].mxu0 }
 0x171   :  { %v1246_v2 = vadd.f32 %v1245_v1, %v1244_v0  ;;  %v1247_v3 = vpop.f32.mrb[2].mxu0 }
 0x172   :  { %v1248_v4 = vpop.f32.mrb[3].mxu0 }
 0x173   :  { %v571_v5 = vadd.f32 %v1246_v2, %v570_v10  ;;  %v1426_v10 = vld [vmem:[%s1889_s7 + $0x38] sm:$0xff]  }
 0x175   :  { %vm576_vm7 = vcmp.gt.f32.partialorder %v571_v5, 0.0  ;;  %v577_v7 = vmul.f32 0.2, %v571_v5 }
 0x177   :  { %v578_v11 = vsel %vm576_vm7, %v571_v5, %v577_v7 }
 0x178   :  { %v586_v12 = vadd.f32 %v1183_v8, %v578_v11 }
 0x17a   :  { %v587_v14 = vpack.c.bf16 %v586_v12, %v586_v12 }
 0x17c   :  { %v593_v15 = vrot.slane %v587_v14, 3  ;;  %v589_v16 = vrot.slane %v587_v14, 1  ;;  %v592_v19 = vrot.slane %v587_v14, 2 }
 0x17e   :  { %594 = vrot.lane.b32.xlu1 %v593_v15, %s1462_s30  ;;  %590 = vrot.lane.b32.xlu0 %v589_v16, %s1462_s30 }
 0x1f0   :  { %v595_v20 = vpop.permute.xlu1 %594  ;;  %v591_v21 = vpop.permute.xlu0 %590 }
 0x1f1   :  { %v598_v22 = vsel %vm83_vm5, %v587_v14, %v591_v21  ;;  %v602_v23 = vsel %vm83_vm5, %v592_v19, %v595_v20 }
 0x1f2   :  { %764 = vmatprep.mubr.bf16.mxu1 %v602_v23 }
 0x1f3   :  { %765 = vmatmul.mubr.bf16.vlgmr.msra.gmra.mrb[4].mxu1 %v598_v22 }
 0x1f4   :  { %1346 = vmatprep.mubr.msk.bf16.mxu1 %vm1464_vm1, %v1463_v33  ;;  %1331 = vmatpush3.bf16.msra.mxu1 %v1419_v27 }
 0x1f5   :  { %1332 = vmatprep.subr.bf16.mxu1 %v1463_v33 }
 0x1f8   :  { %1333 = vmatpush3.bf16.msra.mxu1 %v1420_v28 }
 0x1f9   :  { %1334 = vmatprep.subr.bf16.mxu1 %v1463_v33 }
 0x1fc   :  { %1335 = vmatpush3.bf16.msra.mxu1 %v1421_v29 }
 0x1fd   :  { %1336 = vmatprep.subr.bf16.mxu1 %v1463_v33 }
 0x200   :  { %1337 = vmatpush3.bf16.msra.mxu1 %v1422_v30 }
 0x201   :  { %1338 = vmatprep.subr.bf16.mxu1 %v1463_v33 }
 0x204   :  { %1339 = vmatpush3.bf16.msra.mxu1 %v1423_v31 }
 0x205   :  { %1340 = vmatprep.subr.bf16.mxu1 %v1463_v33 }
 0x208   :  { %1341 = vmatpush3.bf16.msra.mxu1 %v1424_v32 }
 0x209   :  { %1342 = vmatprep.subr.bf16.mxu1 %v1463_v33 }
 0x20c   :  { %1343 = vmatpush3.bf16.msra.mxu1 %v1425_v44 }
 0x20d   :  { %1344 = vmatprep.subr.bf16.mxu1 %v1463_v33 }
 0x210   :  { %1345 = vmatpush3.bf16.msra.mxu1 %v1426_v10 }
 0x2c6   :  { %v1269_v34 = vpop.f32.mrb[4].mxu1 }
 0x2c7   :  { %v1270_v35 = vpop.f32.mrb[5].mxu1 }
 0x2c8   :  { %v1271_v36 = vadd.f32 %v1270_v35, %v1269_v34  ;;  %v1272_v37 = vpop.f32.mrb[6].mxu1 }
 0x2c9   :  { %v1273_v38 = vpop.f32.mrb[7].mxu1 }
 0x2ca   :  { %vm772_vm8 = vcmp.gt.f32.partialorder %v1271_v36, 0.0  ;;  %v773_v39 = vmul.f32 0.2, %v1271_v36 }
 0x2cc   :  { %v774_v41 = vsel %vm772_vm8, %v1271_v36, %v773_v39 }
 0x2cd   :  { %v782_v42 = vadd.f32 %v1200_v40, %v774_v41 }
 0x2cf   :  { %v783_v43 = vpack.c.bf16 %v782_v42, %v782_v42 }
 0x2d1   :  { %1327 = vmatmul.mubr.bf16.vlgmr.msra.gmra.mrb[4].mxu0 %v783_v43 }
 0x2d2   :  { %1366 = vmatprep.mubr.msk.bf16.mxu0 %vm1464_vm1, %v1463_v33  ;;  %1351 = vmatpush3.bf16.msra.mxu0 %v1427_v45 }
 0x2d3   :  { %1352 = vmatprep.subr.bf16.mxu0 %v1463_v33 }
 0x2d6   :  { %1353 = vmatpush3.bf16.msra.mxu0 %v1428_v46 }
 0x2d7   :  { %1354 = vmatprep.subr.bf16.mxu0 %v1463_v33 }
 0x2da   :  { %1355 = vmatpush3.bf16.msra.mxu0 %v1429_v47 }
 0x2db   :  { %1356 = vmatprep.subr.bf16.mxu0 %v1463_v33 }
 0x2de   :  { %1357 = vmatpush3.bf16.msra.mxu0 %v1430_v48 }
 0x2df   :  { %1358 = vmatprep.subr.bf16.mxu0 %v1463_v33 }
 0x2e2   :  { %1359 = vmatpush3.bf16.msra.mxu0 %v1431_v49 }
 0x2e3   :  { %1360 = vmatprep.subr.bf16.mxu0 %v1463_v33 }
 0x2e6   :  { %1361 = vmatpush3.bf16.msra.mxu0 %v1432_v50 }
 0x2e7   :  { %1362 = vmatprep.subr.bf16.mxu0 %v1463_v33 }
 0x2ea   :  { %1363 = vmatpush3.bf16.msra.mxu0 %v1433_v60 }
 0x2eb   :  { %1364 = vmatprep.subr.bf16.mxu0 %v1463_v33  ;;  %v1219_v33 = vld [vmem:[%s1892_s10] ss:$0 sm:$0xff] }
 0x2ee   :  { %1365 = vmatpush3.bf16.msra.mxu0 %v1434_v61 }
 0x3a4   :  { %v882_v51 = vpop.f32.mrb[4].mxu0 }
 0x3a5   :  { %vm888_vm9 = vcmp.gt.f32.partialorder %v882_v51, 0.0  ;;  %v889_v52 = vmul.f32 0.2, %v882_v51  ;;  %v1328_v54 = vpop.f32.mrb[5].mxu0 }
 0x3a6   :  { %v885_v55 = vpop.f32.mrb[6].mxu0 }
 0x3a7   :  { %v890_v56 = vsel %vm888_vm9, %v882_v51, %v889_v52  ;;  %v1329_v57 = vpop.f32.mrb[7].mxu0 }
 0x3a8   :  { %v898_v58 = vadd.f32 %v1209_v53, %v890_v56 }
 0x3aa   :  { %v899_v59 = vpack.c.bf16 %v898_v58, %v898_v58 }
 0x3ac   :  { %1347 = vmatmul.mubr.bf16.vlgmr.msra.gmra.mrb[8].mxu1 %v899_v59 }
 0x47f   :  { %v998_v62 = vpop.f32.mrb[8].mxu1 }
 0x480   :  { %v1004_v0 = vmax.f32 %v998_v62, 0.0  ;;  %v1348_v1 = vpop.f32.mrb[9].mxu1 }
 0x481   :  { %v1001_v2 = vpop.f32.mrb[10].mxu1 }
 0x482   :  { %v1012_v3 = vadd.f32 %v1218_v63, %v1004_v0  ;;  %v1349_v4 = vpop.f32.mrb[11].mxu1 }
 0x484   :  { %v1013_v5 = vpack.c.bf16 %v1012_v3, %v1012_v3 }
 0x486   :  { %1367 = vmatmul.mubr.bf16.vlgmr.msra.gmra.mrb[8].mxu0 %v1013_v5 }
 0x559   :  { %v1119_v6 = vpop.f32.mrb[8].mxu0 }
 0x55a   :  { %v1120_v7 = vadd.f32 %v1219_v33, %v1119_v6  ;;  %v1368_v8 = vpop.f32.mrb[9].mxu0 }
 0x55b   :  { %v1122_v9 = vpop.f32.mrb[10].mxu0 }
 0x55c   :  { %v1369_v11 = vpop.f32.mrb[11].mxu0  ;;  %1126 = vst.msk [vmem:[#allocation2] sm:$0x3] %vm1125_vm10, %v1120_v7 }
 0x55d   :  { %1446 = shalt.err (!%p1443_p4)
}
 0x55e   :  { %s1447_s10 = scalar_lea.hbm %s1893_s11, 32 }
 0x55f   :  { %p1448_p5 = scmp.ne.s32.totalorder %s1893_s11, %s1447_s10  ;;  %p1451_p6 = scmp.lt.u32.totalorder %s1447_s10, %s1893_s11 }
 0x561   :  { %p1453_p7 = pnand %p1451_p6, %p1448_p5 }
 0x563   :  { %1456 = shalt.err (!%p1453_p7)
}
 0x564   :  { %1136 = dma.vmem_to_hbm [thread:$0]  %s1134_s2, 32, %s1893_s11, [#allocation3]  }
 0x565   :  { %1457 = dma.done.wait [#allocation3], 32  }
 0x566   :  { %1458 = vsyncadd [#allocation3], 4294967264 }
 0x567   :  { %1140 = vsyncpa [#allocation3], 1 }

</bundles_post_ra>
